<compile_context>
chip_gen: v7x
topology: tpu7x:2x2x1
jax: 0.10.0
libtpu: 0.0.40
codegen_flags: <defaults>
</compile_context>

<pallas_src>
import functools

import jax
import jax.numpy as jnp
from jax.experimental import pallas as pl
from jax.experimental.pallas import tpu as pltpu


LANE = 128          # TPU lane width; pad node / feature dims to this.
_NEG_BIG = -9e15    # same masking constant as the PyTorch reference


def _round_up(x, m):
    return (x + m - 1) // m * m


# ---------------------------------------------------------------------------
# Kernel 1: row-tiled linear transform  Wh = x @ W_ext  (bf16 MXU, f32 accum).
# W_ext carries W@a_src and W@a_dst folded into two of its zero-padding
# columns, so the attention source/dest terms come out of this matmul free.
# ---------------------------------------------------------------------------
def _linear_kernel(x_ref, w_ref, wh_ref):
    wh_ref[...] = jnp.dot(x_ref[...].astype(jnp.bfloat16), w_ref[...],
                          preferred_element_type=jnp.float32)


def _linear(x, w_ext_bf16, *, tm):
    n_p, f_p = x.shape
    p_out = w_ext_bf16.shape[1]
    return pl.pallas_call(
        _linear_kernel,
        out_shape=jax.ShapeDtypeStruct((n_p, p_out), jnp.float32),
        grid=(n_p // tm,),
        in_specs=[pl.BlockSpec((tm, f_p), lambda i: (i, 0)),
                  pl.BlockSpec((f_p, p_out), lambda i: (0, 0))],
        out_specs=pl.BlockSpec((tm, p_out), lambda i: (i, 0)),
        compiler_params=pltpu.CompilerParams(
            dimension_semantics=("parallel",)),
    )(x, w_ext_bf16)


# ---------------------------------------------------------------------------
# Kernel 2: row-tiled attention.  One grid step handles TM query rows against
# all N_p keys: masked-softmax logits, bf16 attention writeback, aggregation
# on the MXU, then the layer activation (ELU for layer 1, sigmoid for layer 2).
# ---------------------------------------------------------------------------
def _gat_attention_kernel(fsrc_ref, fdst_ref, wh_ref, bias_ref,
                          h_ref, att_ref, *, alpha, activation):
    # e_ij = LeakyReLU(f_src_i + f_dst_j) + bias_ij,  bias in {0, -9e15}.
    e = fsrc_ref[...] + fdst_ref[...]                      # (TM, Np) f32
    e = jnp.maximum(e, alpha * e)                          # LeakyReLU (max form)
    e = e + bias_ref[...].astype(jnp.float32)              # additive adjacency mask

    # Row-wise softmax (dim=1 in the PyTorch reference).
    m = jnp.max(e, axis=-1, keepdims=True)
    p = jnp.exp(e - m)
    denom = jnp.sum(p, axis=-1, keepdims=True)
    attn = (p * pl.reciprocal(denom, approx=True)).astype(att_ref.dtype)
    att_ref[...] = attn                                    # bf16 writeback

    # Aggregate neighbor features: bf16 MXU, f32 accumulation.
    h = jnp.dot(attn.astype(jnp.bfloat16), wh_ref[...],
                preferred_element_type=jnp.float32)        # (TM, P)

    if activation == "elu":
        h = jnp.where(h > 0, h, jnp.exp(jnp.minimum(h, 0.0)) - 1.0)
    elif activation == "sigmoid":
        h = 1.0 / (1.0 + jnp.exp(-h))
    h_ref[...] = h.astype(h_ref.dtype)


def _attention(f_src, f_dst, wh_bf16, bias, *, alpha, activation, att_dtype, tm):
    n_p = bias.shape[0]
    p_out = wh_bf16.shape[1]
    kernel = functools.partial(_gat_attention_kernel, alpha=alpha,
                               activation=activation)
    return pl.pallas_call(
        kernel,
        out_shape=(jax.ShapeDtypeStruct((n_p, p_out), jnp.float32),
                   jax.ShapeDtypeStruct((n_p, n_p), att_dtype)),
        grid=(n_p // tm,),
        in_specs=[pl.BlockSpec((tm, 1), lambda i: (i, 0)),       # f_src rows
                  pl.BlockSpec((1, n_p), lambda i: (0, 0)),      # f_dst row
                  pl.BlockSpec((n_p, p_out), lambda i: (0, 0)),  # full Wh (bf16)
                  pl.BlockSpec((tm, n_p), lambda i: (i, 0))],    # bias rows
        out_specs=(pl.BlockSpec((tm, p_out), lambda i: (i, 0)),
                   pl.BlockSpec((tm, n_p), lambda i: (i, 0))),
        compiler_params=pltpu.CompilerParams(
            dimension_semantics=("parallel",)),
    )(f_src, f_dst, wh_bf16, bias)


# ---------------------------------------------------------------------------
# Wrapper: padding, weight folding, per-layer glue.
# ---------------------------------------------------------------------------
def _build_w_ext(w, a, p_in):
    """Zero-padded weight with W@a_src / W@a_dst folded into padding columns."""
    fin, fout = w.shape
    p_out = _round_up(fout + 2, LANE)       # >= 2 spare columns guaranteed
    w32 = w.astype(jnp.float32)
    a_src = a[:fout, 0].astype(jnp.float32)
    a_dst = a[fout:, 0].astype(jnp.float32)
    w_ext = jnp.zeros((p_in, p_out), jnp.float32)
    w_ext = w_ext.at[:fin, :fout].set(w32)
    w_ext = w_ext.at[:fin, fout].set(w32 @ a_src)       # -> f_src column of Wh
    w_ext = w_ext.at[:fin, fout + 1].set(w32 @ a_dst)   # -> f_dst column of Wh
    return w_ext.astype(jnp.bfloat16), p_out


def _gat_layer(h_in, w_ext_bf16, n_out, bias, *, alpha, activation,
               att_dtype, tm):
    wh = _linear(h_in, w_ext_bf16, tm=tm)               # (Np, P) f32
    f_src = wh[:, n_out:n_out + 1]                      # (Np, 1)
    f_dst = wh[:, n_out + 1][None, :]                   # (1, Np)
    wh_bf = wh.astype(jnp.bfloat16)
    return _attention(f_src, f_dst, wh_bf, bias, alpha=alpha,
                      activation=activation, att_dtype=att_dtype, tm=tm)


def gat2_forward(x, w1, a1, w2, a2, adj, *, alpha,
                 att_dtype=jnp.bfloat16, tm=128):
    """2-layer dense GAT forward (n_layer=2 path of the PyTorch GAT module).

    Returns (out (N,nclass), h1 (N,nhid), att1 (N,N) f32, att2 (N,N) f32).
    """
    assert tm % LANE == 0
    n, nfeat = x.shape
    nhid = w1.shape[1]
    nclass = w2.shape[1]

    # Lane-dense padding: node dim to a multiple of TM (>=128), feature dim
    # to a multiple of 128.  Padded rows/cols are zero / masked and sliced off.
    n_p = _round_up(n, tm)
    f_p = _round_up(nfeat, LANE)

    xp = jnp.zeros((n_p, f_p), jnp.float32).at[:n, :nfeat].set(
        x.astype(jnp.float32))

    # Additive adjacency bias: 0 where edge, -9e15 elsewhere (incl. padding).
    bias = jnp.full((n_p, n_p), _NEG_BIG, jnp.float32)
    bias = bias.at[:n, :n].set(
        jnp.where(adj > 0, 0.0, _NEG_BIG).astype(jnp.float32))
    bias = bias.astype(jnp.bfloat16)

    w1_ext, _p1 = _build_w_ext(w1, a1, f_p)
    w2_ext, _p2 = _build_w_ext(w2, a2, _p1)

    # Layer 1: GraphAttentionLayer(concat=True) -> ELU.
    h1, att1 = _gat_layer(xp, w1_ext, nhid, bias, alpha=alpha,
                          activation="elu", att_dtype=att_dtype, tm=tm)
    # Layer 2: out_att (concat=False) -> sigmoid.
    out, att2 = _gat_layer(h1, w2_ext, nclass, bias, alpha=alpha,
                           activation="sigmoid", att_dtype=att_dtype, tm=tm)

    return (out[:n, :nclass], h1[:n, :nhid],
            att1[:n, :n].astype(jnp.float32),
            att2[:n, :n].astype(jnp.float32))


def init_gat_params(key, nfeat, nhid, nclass):
    """Deterministic xavier-uniform init matching GraphAttentionLayer's W and a."""
    def xavier(k, shape, gain=1.414):
        fan_in, fan_out = shape[0], shape[1]
        bound = gain * jnp.sqrt(6.0 / (fan_in + fan_out))
        return jax.random.uniform(k, shape, jnp.float32, -bound, bound)

    k1, k2, k3, k4 = jax.random.split(key, 4)
    return {
        "W1": xavier(k1, (nfeat, nhid)),
        "a1": xavier(k2, (2 * nhid, 1)),
        "W2": xavier(k3, (nhid, nclass)),
        "a2": xavier(k4, (2 * nclass, 1)),
    }


@functools.partial(jax.jit, static_argnames=("alpha",))
def gat_forward(params, x, adj, *, alpha):
    """Mirrors GAT.forward for n_layer=2: returns (x, gft_list, att_list, attention)."""
    out, h1, att1, att2 = gat2_forward(
        x, params["W1"], params["a1"], params["W2"], params["a2"], adj,
        alpha=alpha)
    return out, [h1], [att1], att2


if __name__ == "__main__":
    # Small, module-consistent shapes.
    N = 64        # number of graph nodes
    NFEAT = 32
    NHID = 16
    NCLASS = 8
    ALPHA = 0.2   # LeakyReLU slope

    key = jax.random.PRNGKey(0)
    kx, kadj, kparams = jax.random.split(key, 3)

    x = jax.random.normal(kx, (N, NFEAT), dtype=jnp.float32)

    # Random symmetric binary adjacency with self-loops.
    a = (jax.random.uniform(kadj, (N, N)) < 0.15).astype(jnp.float32)
    adj = jnp.clip(a + a.T + jnp.eye(N, dtype=jnp.float32), 0.0, 1.0)

    params = init_gat_params(kparams, NFEAT, NHID, NCLASS)

    out, gft_list, att_list, attention = gat_forward(params, x, adj, alpha=ALPHA)

    jax.block_until_ready(out)
    jax.block_until_ready(attention)

    assert out.shape == (N, NCLASS)
    assert attention.shape == (N, N)
    assert gft_list[0].shape == (N, NHID)
    assert att_list[0].shape == (N, N)
    assert bool(jnp.isfinite(out).all())
    assert bool(jnp.isfinite(attention).all())
    # Attention rows are a valid softmax (bf16 storage + approx reciprocal).
    assert bool(jnp.allclose(attention.sum(axis=-1), 1.0, atol=1e-2))
    assert bool(jnp.allclose(att_list[0].sum(axis=-1), 1.0, atol=1e-2))
    print("KERNEL_OK")
</pallas_src>

<mosaic_0001>
module attributes {stable_mosaic.version = 11 : i64} {
  func.func @_linear_kernel(%arg0: i32, %arg1: memref<128x128xf32, #tpu.memory_space<vmem>>, %arg2: memref<128x128xbf16, #tpu.memory_space<vmem>>, %arg3: memref<128x128xf32, #tpu.memory_space<vmem>>) attributes {dimension_semantics = [#tpu.dimension_semantics<parallel>], iteration_bounds = array<i64: 1>, scalar_prefetch = 0 : i64, scratch_operands = 0 : i64, tpu.core_type = #tpu.core_type<tc>, window_params = [{transform_indices = @transform_0, window_bounds = array<i64: 128, 128>}, {pipeline_mode = #tpu.pipeline_mode<synchronous>, transform_indices = @transform_1, window_bounds = array<i64: 128, 128>}, {transform_indices = @transform_2, window_bounds = array<i64: 128, 128>}]} {
    %c0 = arith.constant 0 : index
    %c0_0 = arith.constant 0 : index
    %0 = vector.load %arg1[%c0, %c0_0] : memref<128x128xf32, #tpu.memory_space<vmem>>, vector<128x128xf32>
    %1 = arith.truncf %0 : vector<128x128xf32> to vector<128x128xbf16>
    %c0_1 = arith.constant 0 : index
    %c0_2 = arith.constant 0 : index
    %2 = vector.load %arg2[%c0_1, %c0_2] : memref<128x128xbf16, #tpu.memory_space<vmem>>, vector<128x128xbf16>
    %cst = arith.constant dense<0.000000e+00> : vector<128x128xf32>
    %3 = tpu.matmul %1, %2, %cst {dimension_numbers = #tpu.dot_dimension_numbers<[1], [0], [0], [1], [0, 0, 1, 1], [], []>} : vector<128x128xbf16>, vector<128x128xbf16>, vector<128x128xf32> -> vector<128x128xf32>
    %c0_3 = arith.constant 0 : index
    %c0_4 = arith.constant 0 : index
    %4 = vector.load %arg3[%c0_3, %c0_4] : memref<128x128xf32, #tpu.memory_space<vmem>>, vector<128x128xf32>
    tpu.vector_store %arg3[%c0_3, %c0_4], %3 {strides = array<i32>} : memref<128x128xf32, #tpu.memory_space<vmem>>, vector<128x128xf32>,
    return
  }
  func.func @transform_0(%arg0: i32) -> (i32, i32) {
    %c0_i32 = arith.constant 0 : i32
    %c0_i32_0 = arith.constant 0 : i32
    return %arg0, %c0_i32 : i32, i32
  }
  func.func @transform_1(%arg0: i32) -> (i32, i32) {
    %c0_i32 = arith.constant 0 : i32
    %c0_i32_0 = arith.constant 0 : i32
    %c0_i32_1 = arith.constant 0 : i32
    return %c0_i32, %c0_i32_0 : i32, i32
  }
  func.func @transform_2(%arg0: i32) -> (i32, i32) {
    %c0_i32 = arith.constant 0 : i32
    %c0_i32_0 = arith.constant 0 : i32
    return %arg0, %c0_i32 : i32, i32
  }
}

module attributes {stable_mosaic.version = 11 : i64} {
  func.func @_gat_attention_kernel(%arg0: i32, %arg1: memref<128x1xf32, #tpu.memory_space<vmem>>, %arg2: memref<1x128xf32, #tpu.memory_space<vmem>>, %arg3: memref<128x128xbf16, #tpu.memory_space<vmem>>, %arg4: memref<128x128xbf16, #tpu.memory_space<vmem>>, %arg5: memref<128x128xf32, #tpu.memory_space<vmem>>, %arg6: memref<128x128xbf16, #tpu.memory_space<vmem>>) attributes {dimension_semantics = [#tpu.dimension_semantics<parallel>], iteration_bounds = array<i64: 1>, scalar_prefetch = 0 : i64, scratch_operands = 0 : i64, tpu.core_type = #tpu.core_type<tc>, window_params = [{transform_indices = @transform_0, window_bounds = array<i64: 128, 1>}, {pipeline_mode = #tpu.pipeline_mode<synchronous>, transform_indices = @transform_1, window_bounds = array<i64: 1, 128>}, {pipeline_mode = #tpu.pipeline_mode<synchronous>, transform_indices = @transform_2, window_bounds = array<i64: 128, 128>}, {transform_indices = @transform_3, window_bounds = array<i64: 128, 128>}, {transform_indices = @transform_4, window_bounds = array<i64: 128, 128>}, {transform_indices = @transform_5, window_bounds = array<i64: 128, 128>}]} {
    %c0 = arith.constant 0 : index
    %c0_0 = arith.constant 0 : index
    %0 = vector.load %arg1[%c0, %c0_0] : memref<128x1xf32, #tpu.memory_space<vmem>>, vector<128x1xf32>
    %c0_1 = arith.constant 0 : index
    %c0_2 = arith.constant 0 : index
    %1 = vector.load %arg2[%c0_1, %c0_2] : memref<1x128xf32, #tpu.memory_space<vmem>>, vector<1x128xf32>
    %2 = vector.broadcast %0 : vector<128x1xf32> to vector<128x128xf32>
    %3 = vector.broadcast %1 : vector<1x128xf32> to vector<128x128xf32>
    %4 = arith.addf %2, %3 : vector<128x128xf32>
    %cst = arith.constant 2.000000e-01 : f32
    %5 = vector.broadcast %cst : f32 to vector<128x128xf32>
    %6 = arith.mulf %5, %4 : vector<128x128xf32>
    %7 = arith.maximumf %4, %6 : vector<128x128xf32>
    %c0_3 = arith.constant 0 : index
    %c0_4 = arith.constant 0 : index
    %8 = vector.load %arg4[%c0_3, %c0_4] : memref<128x128xbf16, #tpu.memory_space<vmem>>, vector<128x128xbf16>
    %9 = arith.extf %8 : vector<128x128xbf16> to vector<128x128xf32>
    %10 = arith.addf %7, %9 : vector<128x128xf32>
    %cst_5 = arith.constant dense<0xFF800000> : vector<128xf32>
    %11 = vector.multi_reduction <maximumf>, %10, %cst_5 [1] : vector<128x128xf32> to vector<128xf32>
    %12 = vector.shape_cast %11 : vector<128xf32> to vector<128x1xf32>
    %13 = vector.broadcast %12 : vector<128x1xf32> to vector<128x128xf32>
    %14 = arith.subf %10, %13 : vector<128x128xf32>
    %15 = math.exp %14 : vector<128x128xf32>
    %cst_6 = arith.constant dense<0.000000e+00> : vector<128xf32>
    %16 = vector.multi_reduction <add>, %15, %cst_6 [1] : vector<128x128xf32> to vector<128xf32>
    %17 = vector.shape_cast %16 : vector<128xf32> to vector<128x1xf32>
    %18 = tpu.reciprocal %17 {approx = true} : vector<128x1xf32> -> vector<128x1xf32>
    %19 = vector.broadcast %18 : vector<128x1xf32> to vector<128x128xf32>
    %20 = arith.mulf %15, %19 : vector<128x128xf32>
    %21 = arith.truncf %20 : vector<128x128xf32> to vector<128x128xbf16>
    %c0_7 = arith.constant 0 : index
    %c0_8 = arith.constant 0 : index
    %22 = vector.load %arg6[%c0_7, %c0_8] : memref<128x128xbf16, #tpu.memory_space<vmem>>, vector<128x128xbf16>
    tpu.vector_store %arg6[%c0_7, %c0_8], %21 {strides = array<i32>} : memref<128x128xbf16, #tpu.memory_space<vmem>>, vector<128x128xbf16>,
    %c0_9 = arith.constant 0 : index
    %c0_10 = arith.constant 0 : index
    %23 = vector.load %arg3[%c0_9, %c0_10] : memref<128x128xbf16, #tpu.memory_space<vmem>>, vector<128x128xbf16>
    %cst_11 = arith.constant dense<0.000000e+00> : vector<128x128xf32>
    %24 = tpu.matmul %21, %23, %cst_11 {dimension_numbers = #tpu.dot_dimension_numbers<[1], [0], [0], [1], [0, 0, 1, 1], [], []>} : vector<128x128xbf16>, vector<128x128xbf16>, vector<128x128xf32> -> vector<128x128xf32>
    %cst_12 = arith.constant 0.000000e+00 : f32
    %25 = vector.broadcast %cst_12 : f32 to vector<128x128xf32>
    %26 = arith.cmpf ogt, %24, %25 : vector<128x128xf32>
    %cst_13 = arith.constant 0.000000e+00 : f32
    %27 = vector.broadcast %cst_13 : f32 to vector<128x128xf32>
    %28 = arith.minimumf %24, %27 : vector<128x128xf32>
    %29 = math.exp %28 : vector<128x128xf32>
    %cst_14 = arith.constant 1.000000e+00 : f32
    %30 = vector.broadcast %cst_14 : f32 to vector<128x128xf32>
    %31 = arith.subf %29, %30 : vector<128x128xf32>
    %32 = arith.select %26, %24, %31 : vector<128x128xi1>, vector<128x128xf32>
    %c0_15 = arith.constant 0 : index
    %c0_16 = arith.constant 0 : index
    %33 = vector.load %arg5[%c0_15, %c0_16] : memref<128x128xf32, #tpu.memory_space<vmem>>, vector<128x128xf32>
    tpu.vector_store %arg5[%c0_15, %c0_16], %32 {strides = array<i32>} : memref<128x128xf32, #tpu.memory_space<vmem>>, vector<128x128xf32>,
    return
  }
  func.func @transform_0(%arg0: i32) -> (i32, i32) {
    %c0_i32 = arith.constant 0 : i32
    %c0_i32_0 = arith.constant 0 : i32
    return %arg0, %c0_i32 : i32, i32
  }
  func.func @transform_1(%arg0: i32) -> (i32, i32) {
    %c0_i32 = arith.constant 0 : i32
    %c0_i32_0 = arith.constant 0 : i32
    %c0_i32_1 = arith.constant 0 : i32
    return %c0_i32, %c0_i32_0 : i32, i32
  }
  func.func @transform_2(%arg0: i32) -> (i32, i32) {
    %c0_i32 = arith.constant 0 : i32
    %c0_i32_0 = arith.constant 0 : i32
    %c0_i32_1 = arith.constant 0 : i32
    return %c0_i32, %c0_i32_0 : i32, i32
  }
  func.func @transform_3(%arg0: i32) -> (i32, i32) {
    %c0_i32 = arith.constant 0 : i32
    %c0_i32_0 = arith.constant 0 : i32
    return %arg0, %c0_i32 : i32, i32
  }
  func.func @transform_4(%arg0: i32) -> (i32, i32) {
    %c0_i32 = arith.constant 0 : i32
    %c0_i32_0 = arith.constant 0 : i32
    return %arg0, %c0_i32 : i32, i32
  }
  func.func @transform_5(%arg0: i32) -> (i32, i32) {
    %c0_i32 = arith.constant 0 : i32
    %c0_i32_0 = arith.constant 0 : i32
    return %arg0, %c0_i32 : i32, i32
  }
}

module attributes {stable_mosaic.version = 11 : i64} {
  func.func @_gat_attention_kernel(%arg0: i32, %arg1: memref<128x1xf32, #tpu.memory_space<vmem>>, %arg2: memref<1x128xf32, #tpu.memory_space<vmem>>, %arg3: memref<128x128xbf16, #tpu.memory_space<vmem>>, %arg4: memref<128x128xbf16, #tpu.memory_space<vmem>>, %arg5: memref<128x128xf32, #tpu.memory_space<vmem>>, %arg6: memref<128x128xbf16, #tpu.memory_space<vmem>>) attributes {dimension_semantics = [#tpu.dimension_semantics<parallel>], iteration_bounds = array<i64: 1>, scalar_prefetch = 0 : i64, scratch_operands = 0 : i64, tpu.core_type = #tpu.core_type<tc>, window_params = [{transform_indices = @transform_0, window_bounds = array<i64: 128, 1>}, {pipeline_mode = #tpu.pipeline_mode<synchronous>, transform_indices = @transform_1, window_bounds = array<i64: 1, 128>}, {pipeline_mode = #tpu.pipeline_mode<synchronous>, transform_indices = @transform_2, window_bounds = array<i64: 128, 128>}, {transform_indices = @transform_3, window_bounds = array<i64: 128, 128>}, {transform_indices = @transform_4, window_bounds = array<i64: 128, 128>}, {transform_indices = @transform_5, window_bounds = array<i64: 128, 128>}]} {
    %c0 = arith.constant 0 : index
    %c0_0 = arith.constant 0 : index
    %0 = vector.load %arg1[%c0, %c0_0] : memref<128x1xf32, #tpu.memory_space<vmem>>, vector<128x1xf32>
    %c0_1 = arith.constant 0 : index
    %c0_2 = arith.constant 0 : index
    %1 = vector.load %arg2[%c0_1, %c0_2] : memref<1x128xf32, #tpu.memory_space<vmem>>, vector<1x128xf32>
    %2 = vector.broadcast %0 : vector<128x1xf32> to vector<128x128xf32>
    %3 = vector.broadcast %1 : vector<1x128xf32> to vector<128x128xf32>
    %4 = arith.addf %2, %3 : vector<128x128xf32>
    %cst = arith.constant 2.000000e-01 : f32
    %5 = vector.broadcast %cst : f32 to vector<128x128xf32>
    %6 = arith.mulf %5, %4 : vector<128x128xf32>
    %7 = arith.maximumf %4, %6 : vector<128x128xf32>
    %c0_3 = arith.constant 0 : index
    %c0_4 = arith.constant 0 : index
    %8 = vector.load %arg4[%c0_3, %c0_4] : memref<128x128xbf16, #tpu.memory_space<vmem>>, vector<128x128xbf16>
    %9 = arith.extf %8 : vector<128x128xbf16> to vector<128x128xf32>
    %10 = arith.addf %7, %9 : vector<128x128xf32>
    %cst_5 = arith.constant dense<0xFF800000> : vector<128xf32>
    %11 = vector.multi_reduction <maximumf>, %10, %cst_5 [1] : vector<128x128xf32> to vector<128xf32>
    %12 = vector.shape_cast %11 : vector<128xf32> to vector<128x1xf32>
    %13 = vector.broadcast %12 : vector<128x1xf32> to vector<128x128xf32>
    %14 = arith.subf %10, %13 : vector<128x128xf32>
    %15 = math.exp %14 : vector<128x128xf32>
    %cst_6 = arith.constant dense<0.000000e+00> : vector<128xf32>
    %16 = vector.multi_reduction <add>, %15, %cst_6 [1] : vector<128x128xf32> to vector<128xf32>
    %17 = vector.shape_cast %16 : vector<128xf32> to vector<128x1xf32>
    %18 = tpu.reciprocal %17 {approx = true} : vector<128x1xf32> -> vector<128x1xf32>
    %19 = vector.broadcast %18 : vector<128x1xf32> to vector<128x128xf32>
    %20 = arith.mulf %15, %19 : vector<128x128xf32>
    %21 = arith.truncf %20 : vector<128x128xf32> to vector<128x128xbf16>
    %c0_7 = arith.constant 0 : index
    %c0_8 = arith.constant 0 : index
    %22 = vector.load %arg6[%c0_7, %c0_8] : memref<128x128xbf16, #tpu.memory_space<vmem>>, vector<128x128xbf16>
    tpu.vector_store %arg6[%c0_7, %c0_8], %21 {strides = array<i32>} : memref<128x128xbf16, #tpu.memory_space<vmem>>, vector<128x128xbf16>,
    %c0_9 = arith.constant 0 : index
    %c0_10 = arith.constant 0 : index
    %23 = vector.load %arg3[%c0_9, %c0_10] : memref<128x128xbf16, #tpu.memory_space<vmem>>, vector<128x128xbf16>
    %cst_11 = arith.constant dense<0.000000e+00> : vector<128x128xf32>
    %24 = tpu.matmul %21, %23, %cst_11 {dimension_numbers = #tpu.dot_dimension_numbers<[1], [0], [0], [1], [0, 0, 1, 1], [], []>} : vector<128x128xbf16>, vector<128x128xbf16>, vector<128x128xf32> -> vector<128x128xf32>
    %cst_12 = arith.constant 0.000000e+00 : f32
    %25 = vector.broadcast %cst_12 : f32 to vector<128x128xf32>
    %26 = arith.subf %25, %24 : vector<128x128xf32>
    %27 = math.exp %26 : vector<128x128xf32>
    %cst_13 = arith.constant 1.000000e+00 : f32
    %28 = vector.broadcast %cst_13 : f32 to vector<128x128xf32>
    %29 = arith.addf %28, %27 : vector<128x128xf32>
    %cst_14 = arith.constant 1.000000e+00 : f32
    %30 = vector.broadcast %cst_14 : f32 to vector<128x128xf32>
    %31 = arith.divf %30, %29 : vector<128x128xf32>
    %c0_15 = arith.constant 0 : index
    %c0_16 = arith.constant 0 : index
    %32 = vector.load %arg5[%c0_15, %c0_16] : memref<128x128xf32, #tpu.memory_space<vmem>>, vector<128x128xf32>
    tpu.vector_store %arg5[%c0_15, %c0_16], %31 {strides = array<i32>} : memref<128x128xf32, #tpu.memory_space<vmem>>, vector<128x128xf32>,
    return
  }
  func.func @transform_0(%arg0: i32) -> (i32, i32) {
    %c0_i32 = arith.constant 0 : i32
    %c0_i32_0 = arith.constant 0 : i32
    return %arg0, %c0_i32 : i32, i32
  }
  func.func @transform_1(%arg0: i32) -> (i32, i32) {
    %c0_i32 = arith.constant 0 : i32
    %c0_i32_0 = arith.constant 0 : i32
    %c0_i32_1 = arith.constant 0 : i32
    return %c0_i32, %c0_i32_0 : i32, i32
  }
  func.func @transform_2(%arg0: i32) -> (i32, i32) {
    %c0_i32 = arith.constant 0 : i32
    %c0_i32_0 = arith.constant 0 : i32
    %c0_i32_1 = arith.constant 0 : i32
    return %c0_i32, %c0_i32_0 : i32, i32
  }
  func.func @transform_3(%arg0: i32) -> (i32, i32) {
    %c0_i32 = arith.constant 0 : i32
    %c0_i32_0 = arith.constant 0 : i32
    return %arg0, %c0_i32 : i32, i32
  }
  func.func @transform_4(%arg0: i32) -> (i32, i32) {
    %c0_i32 = arith.constant 0 : i32
    %c0_i32_0 = arith.constant 0 : i32
    return %arg0, %c0_i32 : i32, i32
  }
  func.func @transform_5(%arg0: i32) -> (i32, i32) {
    %c0_i32 = arith.constant 0 : i32
    %c0_i32_0 = arith.constant 0 : i32
    return %arg0, %c0_i32 : i32, i32
  }
}

</mosaic_0001>

<bundles_post_ra>
// kernel: gat_forward.4
= control target key start
LH: loop header
LB: loop body
LE: loop exit
PB: predicated region body
PF: predicated region fallthrough
CT: control target
= control target key end

     0   :  { %s432_s1 = inlined_call_operand.vmem [shape: bf16[128,128], index: 1, kind: input, shape index: {}]   ;;  %s433_s0 = inlined_call_operand.vmem [shape: f32[128,128], index: 0, kind: input, shape index: {}]   ;;  %s434_s2 = inlined_call_operand.vmem [shape: f32[128,128], index: 2, kind: output, shape index: {}]  }
   0x1   :  { %v289_v0 = vld [vmem:[%s432_s1] sm:$0xff]   ;;  %v290_v1 = vld [vmem:[%s432_s1 + $0x8] sm:$0xff]   ;;  %v291_v2 = vld [vmem:[%s432_s1 + $0x10] sm:$0xff]  }
   0x2   :  { %241 = vmatprep.subr.bf16.mxu0 %v289_v0  ;;  %273 = vmatprep.subr.bf16.mxu1 %v289_v0  ;;  %v292_v3 = vld [vmem:[%s432_s1 + $0x18] sm:$0xff]   ;;  %v12_v4 = vld [vmem:[%s433_s0] sm:$0xff]  ;;  %v13_v5 = vld [vmem:[%s433_s0 + $0x8] sm:$0xff] }
   0x3   :  { %242 = vmatpush3.bf16.msra.mxu0 %v289_v0  ;;  %281 = vmatpush3.bf16.msra.mxu1 %v289_v0  ;;  %v20_v6 = vld [vmem:[%s433_s0 + $0x40] sm:$0xff]  ;;  %v28_v7 = vpack.c.bf16 %v13_v5, %v12_v4  ;;  %v21_v8 = vld [vmem:[%s433_s0 + $0x48] sm:$0xff]  ;;  %v295_v12 = vld [vmem:[%s432_s1 + $0x30] sm:$0xff]  }
   0x4   :  { %243 = vmatprep.subr.bf16.mxu0 %v290_v1  ;;  %274 = vmatprep.subr.bf16.mxu1 %v290_v1  ;;  %v32_v9 = vpack.c.bf16 %v21_v8, %v20_v6  ;;  %v293_v10 = vld [vmem:[%s432_s1 + $0x20] sm:$0xff]   ;;  %v294_v11 = vld [vmem:[%s432_s1 + $0x28] sm:$0xff]   ;;  %v296_v13 = vld [vmem:[%s432_s1 + $0x38] sm:$0xff]  }
   0x5   :  { %257 = vmatprep.mubr.bf16.mxu0 %v28_v7  ;;  %v14_v14 = vld [vmem:[%s433_s0 + $0x10] sm:$0xff]  ;;  %v15_v15 = vld [vmem:[%s433_s0 + $0x18] sm:$0xff]  ;;  %v16_v18 = vld [vmem:[%s433_s0 + $0x20] sm:$0xff] }
   0x6   :  { %265 = vmatprep.mubr.bf16.mxu1 %v32_v9  ;;  %v22_v16 = vld [vmem:[%s433_s0 + $0x50] sm:$0xff]  ;;  %v23_v17 = vld [vmem:[%s433_s0 + $0x58] sm:$0xff]  ;;  %v17_v19 = vld [vmem:[%s433_s0 + $0x28] sm:$0xff]  ;;  %v29_v22 = vpack.c.bf16 %v15_v15, %v14_v14 }
   0x7   :  { %244 = vmatpush3.bf16.msra.mxu0 %v290_v1  ;;  %282 = vmatpush3.bf16.msra.mxu1 %v290_v1  ;;  %v24_v20 = vld [vmem:[%s433_s0 + $0x60] sm:$0xff]  ;;  %v25_v21 = vld [vmem:[%s433_s0 + $0x68] sm:$0xff]  ;;  %v33_v23 = vpack.c.bf16 %v23_v17, %v22_v16  ;;  %v30_v24 = vpack.c.bf16 %v17_v19, %v16_v18  ;;  %v18_v26 = vld [vmem:[%s433_s0 + $0x30] sm:$0xff] }
   0x8   :  { %245 = vmatprep.subr.bf16.mxu0 %v291_v2  ;;  %275 = vmatprep.subr.bf16.mxu1 %v291_v2  ;;  %v34_v25 = vpack.c.bf16 %v25_v21, %v24_v20  ;;  %v19_v27 = vld [vmem:[%s433_s0 + $0x38] sm:$0xff]  ;;  %v26_v28 = vld [vmem:[%s433_s0 + $0x70] sm:$0xff] }
   0x9   :  { %v27_v29 = vld [vmem:[%s433_s0 + $0x78] sm:$0xff]  ;;  %v31_v30 = vpack.c.bf16 %v19_v27, %v18_v26 }
   0xa   :  { %v35_v31 = vpack.c.bf16 %v27_v29, %v26_v28 }
   0xb   :  { %246 = vmatpush3.bf16.msra.mxu0 %v291_v2  ;;  %283 = vmatpush3.bf16.msra.mxu1 %v291_v2 }
   0xc   :  { %247 = vmatprep.subr.bf16.mxu0 %v292_v3  ;;  %276 = vmatprep.subr.bf16.mxu1 %v292_v3 }
   0xf   :  { %248 = vmatpush3.bf16.msra.mxu0 %v292_v3  ;;  %284 = vmatpush3.bf16.msra.mxu1 %v292_v3 }
  0x10   :  { %249 = vmatprep.subr.bf16.mxu0 %v293_v10  ;;  %277 = vmatprep.subr.bf16.mxu1 %v293_v10 }
  0x13   :  { %250 = vmatpush3.bf16.msra.mxu0 %v293_v10  ;;  %285 = vmatpush3.bf16.msra.mxu1 %v293_v10 }
  0x14   :  { %251 = vmatprep.subr.bf16.mxu0 %v294_v11  ;;  %278 = vmatprep.subr.bf16.mxu1 %v294_v11 }
  0x17   :  { %252 = vmatpush3.bf16.msra.mxu0 %v294_v11  ;;  %286 = vmatpush3.bf16.msra.mxu1 %v294_v11 }
  0x18   :  { %253 = vmatprep.subr.bf16.mxu0 %v295_v12  ;;  %279 = vmatprep.subr.bf16.mxu1 %v295_v12 }
  0x1b   :  { %254 = vmatpush3.bf16.msra.mxu0 %v295_v12  ;;  %287 = vmatpush3.bf16.msra.mxu1 %v295_v12 }
  0x1c   :  { %255 = vmatprep.subr.bf16.mxu0 %v296_v13  ;;  %280 = vmatprep.subr.bf16.mxu1 %v296_v13 }
  0x1f   :  { %256 = vmatpush3.bf16.msra.mxu0 %v296_v13  ;;  %288 = vmatpush3.bf16.msra.mxu1 %v296_v13 }
  0x22   :  { %258 = vmatmul.mubr.bf16.vlgmr.msra.gmra.mrb[0].mxu0 %v29_v22  ;;  %266 = vmatmul.mubr.bf16.vlgmr.msra.gmra.mrb[0].mxu1 %v33_v23 }
  0x23   :  { %261 = vmatprep.mubr.bf16.mxu0 %v30_v24  ;;  %269 = vmatprep.mubr.bf16.mxu1 %v34_v25 }
  0x2a   :  { %262 = vmatmul.mubr.bf16.gmra.mrb[4].mxu0 %v31_v30  ;;  %270 = vmatmul.mubr.bf16.gmra.mrb[4].mxu1 %v35_v31 }
  0xf5   :  { %v259_v32 = vpop.f32.mrb[0].mxu0  ;;  %v267_v33 = vpop.f32.mrb[0].mxu1 }
  0xf6   :  { %199 = vst [vmem:[%s434_s2 + $0x10] sm:$0xff] %v259_v32  ;;  %207 = vst [vmem:[%s434_s2 + $0x50] sm:$0xff] %v267_v33  ;;  %v134_v34 = vpop.f32.mrb[1].mxu0  ;;  %v166_v35 = vpop.f32.mrb[1].mxu1 }
  0xf7   :  { %197 = vst [vmem:[%s434_s2] sm:$0xff] %v134_v34  ;;  %205 = vst [vmem:[%s434_s2 + $0x40] sm:$0xff] %v166_v35  ;;  %v260_v36 = vpop.f32.mrb[2].mxu0  ;;  %v268_v37 = vpop.f32.mrb[2].mxu1 }
  0xf8   :  { %200 = vst [vmem:[%s434_s2 + $0x18] sm:$0xff] %v260_v36  ;;  %208 = vst [vmem:[%s434_s2 + $0x58] sm:$0xff] %v268_v37  ;;  %v137_v38 = vpop.f32.mrb[3].mxu0  ;;  %v169_v39 = vpop.f32.mrb[3].mxu1 }
  0xf9   :  { %198 = vst [vmem:[%s434_s2 + $0x8] sm:$0xff] %v137_v38  ;;  %206 = vst [vmem:[%s434_s2 + $0x48] sm:$0xff] %v169_v39 }
  0xfd   :  { %v263_v40 = vpop.f32.mrb[4].mxu0  ;;  %v271_v41 = vpop.f32.mrb[4].mxu1 }
  0xfe   :  { %203 = vst [vmem:[%s434_s2 + $0x30] sm:$0xff] %v263_v40  ;;  %211 = vst [vmem:[%s434_s2 + $0x70] sm:$0xff] %v271_v41  ;;  %v150_v42 = vpop.f32.mrb[5].mxu0  ;;  %v182_v43 = vpop.f32.mrb[5].mxu1 }
  0xff   :  { %201 = vst [vmem:[%s434_s2 + $0x20] sm:$0xff] %v150_v42  ;;  %209 = vst [vmem:[%s434_s2 + $0x60] sm:$0xff] %v182_v43  ;;  %v264_v44 = vpop.f32.mrb[6].mxu0  ;;  %v272_v45 = vpop.f32.mrb[6].mxu1 }
 0x100   :  { %204 = vst [vmem:[%s434_s2 + $0x38] sm:$0xff] %v264_v44  ;;  %212 = vst [vmem:[%s434_s2 + $0x78] sm:$0xff] %v272_v45  ;;  %v153_v46 = vpop.f32.mrb[7].mxu0  ;;  %v185_v47 = vpop.f32.mrb[7].mxu1 }
 0x101   :  { %202 = vst [vmem:[%s434_s2 + $0x28] sm:$0xff] %v153_v46  ;;  %210 = vst [vmem:[%s434_s2 + $0x68] sm:$0xff] %v185_v47 }

// kernel: gat_forward.5
= control target key start
LH: loop header
LB: loop body
LE: loop exit
PB: predicated region body
PF: predicated region fallthrough
CT: control target
= control target key end

     0   :  { %v1038_v0 = vmov 0   ;;  %s1450_s0 = inlined_call_operand.vmem [shape: f32[128,1], index: 0, kind: input, shape index: {}]   ;;  %s1451_s1 = inlined_call_operand.vmem [shape: f32[1,128], index: 1, kind: input, shape index: {}]   ;;  %s1452_s3 = inlined_call_operand.vmem [shape: bf16[128,128], index: 3, kind: input, shape index: {}]   ;;  %s1453_s2 = inlined_call_operand.vmem [shape: bf16[128,128], index: 2, kind: input, shape index: {}]   ;;  %s1454_s5 = inlined_call_operand.vmem [shape: bf16[128,128], index: 5, kind: output, shape index: {1}]   ;;  %s1455_s4 = inlined_call_operand.vmem [shape: f32[128,128], index: 4, kind: output, shape index: {0}]  }
   0x1   :  { %933 = vset.pattern.permute.xlu1 %v1038_v0  ;;  %932 = vset.pattern.permute.xlu0 %v1038_v0  ;;  %v28_v1 = vld [vmem:[%s1450_s0 + $0x40] sm:$0xff]  ;;  %v29_v3 = vld [vmem:[%s1450_s0 + $0x48] sm:$0xff]  ;;  %v23_v5 = vld [vmem:[%s1450_s0 + $0x18] sm:$0xff] }
   0x2   :  { %v20_v2 = vld [vmem:[%s1450_s0] sm:$0xff]  ;;  %79 = vperm.xlu1 %933, %v28_v1   ;;  %v21_v4 = vld [vmem:[%s1450_s0 + $0x8] sm:$0xff]  ;;  %v22_v6 = vld [vmem:[%s1450_s0 + $0x10] sm:$0xff] }
   0x3   :  { %39 = vperm.xlu0 %932, %v20_v2   ;;  %v31_v7 = vld [vmem:[%s1450_s0 + $0x58] sm:$0xff]  ;;  %v30_v8 = vld [vmem:[%s1450_s0 + $0x50] sm:$0xff]  ;;  %v25_v9 = vld [vmem:[%s1450_s0 + $0x28] sm:$0xff] }
   0x4   :  { %v24_v10 = vld [vmem:[%s1450_s0 + $0x20] sm:$0xff]  ;;  %v33_v11 = vld [vmem:[%s1450_s0 + $0x68] sm:$0xff]  ;;  %v27_v13 = vld [vmem:[%s1450_s0 + $0x38] sm:$0xff] }
   0x5   :  { %v32_v12 = vld [vmem:[%s1450_s0 + $0x60] sm:$0xff]  ;;  %v26_v14 = vld [vmem:[%s1450_s0 + $0x30] sm:$0xff]  ;;  %v35_v15 = vld [vmem:[%s1450_s0 + $0x78] sm:$0xff] }
   0x6   :  { %84 = vperm.xlu1 %933, %v29_v3   ;;  %v34_v16 = vld [vmem:[%s1450_s0 + $0x70] sm:$0xff]  ;;  %v1120_v17 = vld [vmem:[%s1451_s1] ss:$0 sm:$0xff]  ;;  %v853_v38 = vld [vmem:[%s1452_s3 + $0x8] sm:$0xff]  }
   0x7   :  { %44 = vperm.xlu0 %932, %v21_v4   ;;  %v782_v20 = vld [vmem:[%s1452_s3] sm:$0xff]   ;;  %v787_v46 = vunpack.c.l.bf16 %v853_v38  ;;  %v857_v51 = vld [vmem:[%s1452_s3 + $0x28] sm:$0xff]   ;;  %v788_v58 = vunpack.c.h.bf16 %v853_v38  ;;  %v854_v0 = vld [vmem:[%s1452_s3 + $0x10] sm:$0xff]  }
   0x8   :  { %v783_v25 = vunpack.c.l.bf16 %v782_v20  ;;  %v856_v26 = vld [vmem:[%s1452_s3 + $0x20] sm:$0xff]   ;;  %v784_v33 = vunpack.c.h.bf16 %v782_v20  ;;  %v803_v59 = vunpack.c.l.bf16 %v857_v51 }
   0x9   :  { %v799_v32 = vunpack.c.l.bf16 %v856_v26  ;;  %v800_v45 = vunpack.c.h.bf16 %v856_v26 }
   0xa   :  { %54 = vperm.xlu1 %933, %v23_v5  }
   0xb   :  { %49 = vperm.xlu0 %932, %v22_v6  }
   0xe   :  { %94 = vperm.xlu1 %933, %v31_v7   ;;  %v804_v7 = vunpack.c.h.bf16 %v857_v51 }
   0xf   :  { %89 = vperm.xlu0 %932, %v30_v8   ;;  %v791_v8 = vunpack.c.l.bf16 %v854_v0 }
  0x12   :  { %64 = vperm.xlu1 %933, %v25_v9  }
  0x13   :  { %59 = vperm.xlu0 %932, %v24_v10  }
  0x16   :  { %104 = vperm.xlu1 %933, %v33_v11  }
  0x17   :  { %99 = vperm.xlu0 %932, %v32_v12  }
  0x1a   :  { %74 = vperm.xlu1 %933, %v27_v13   ;;  %v858_v13 = vld [vmem:[%s1452_s3 + $0x30] sm:$0xff]  }
  0x1b   :  { %69 = vperm.xlu0 %932, %v26_v14  }
  0x1e   :  { %114 = vperm.xlu1 %933, %v35_v15  }
  0x1f   :  { %109 = vperm.xlu0 %932, %v34_v16  }
  0x81   :  { %v80_v18 = vpop.permute.xlu1 %79 }
  0x82   :  { %v40_v19 = vpop.permute.xlu0 %39  ;;  %v131_v21 = vadd.f32 %v1120_v17, %v80_v18 }
  0x83   :  { %v123_v22 = vadd.f32 %v1120_v17, %v40_v19 }
  0x84   :  { %v147_v23 = vmul.f32 0.2, %v131_v21 }
  0x85   :  { %v139_v24 = vmul.f32 0.2, %v123_v22  ;;  %v85_v27 = vpop.permute.xlu1 %84 }
  0x86   :  { %v45_v28 = vpop.permute.xlu0 %44  ;;  %v132_v30 = vadd.f32 %v1120_v17, %v85_v27  ;;  %v163_v34 = vmax.f32 %v131_v21, %v147_v23  ;;  %v792_v21 = vunpack.c.h.bf16 %v854_v0  ;;  %v855_v27 = vld [vmem:[%s1452_s3 + $0x18] sm:$0xff]   ;;  %v935_v0 = vld [vmem:[%s1453_s2 + $0x8] sm:$0xff]  }
  0x87   :  { %v155_v29 = vmax.f32 %v123_v22, %v139_v24  ;;  %v124_v31 = vadd.f32 %v1120_v17, %v45_v28  ;;  %v807_v22 = vunpack.c.l.bf16 %v858_v13 }
  0x88   :  { %v148_v35 = vmul.f32 0.2, %v132_v30  ;;  %v1140_v49 = vadd.f32 %v799_v32, %v163_v34  ;;  %v808_v34 = vunpack.c.h.bf16 %v858_v13 }
  0x89   :  { %v140_v36 = vmul.f32 0.2, %v124_v31  ;;  %v1132_v37 = vadd.f32 %v783_v25, %v155_v29  ;;  %v55_v39 = vpop.permute.xlu1 %54 }
  0x8a   :  { %v50_v40 = vpop.permute.xlu0 %49  ;;  %v126_v42 = vadd.f32 %v1120_v17, %v55_v39  ;;  %v164_v44 = vmax.f32 %v132_v30, %v148_v35  ;;  %v795_v35 = vunpack.c.l.bf16 %v855_v27 }
  0x8b   :  { %v156_v41 = vmax.f32 %v124_v31, %v140_v36  ;;  %v125_v43 = vadd.f32 %v1120_v17, %v50_v40  ;;  %219 = vmax.xlane.f32.xlu0 %v1132_v37 }
  0x8c   :  { %v142_v47 = vmul.f32 0.2, %v126_v42  ;;  %v1151_v57 = vadd.f32 %v800_v45, %v164_v44 }
  0x8d   :  { %v141_v48 = vmul.f32 0.2, %v125_v43  ;;  %v1142_v50 = vadd.f32 %v784_v33, %v156_v41  ;;  %v95_v52 = vpop.permute.xlu1 %94  ;;  %v859_v41 = vld [vmem:[%s1452_s3 + $0x38] sm:$0xff]  }
  0x8e   :  { %v90_v53 = vpop.permute.xlu0 %89  ;;  %v134_v55 = vadd.f32 %v1120_v17, %v95_v52  ;;  %v158_v60 = vmax.f32 %v126_v42, %v142_v47  ;;  %v811_v51 = vunpack.c.l.bf16 %v859_v41 }
  0x8f   :  { %v157_v54 = vmax.f32 %v125_v43, %v141_v48  ;;  %v133_v56 = vadd.f32 %v1120_v17, %v90_v53  ;;  %235 = vmax.xlane.f32.xlu0 %v1140_v49  ;;  %221 = vmax.xlane.f32.xlu1 %v1142_v50  ;;  %v796_v48 = vunpack.c.h.bf16 %v855_v27 }
  0x90   :  { %v150_v61 = vmul.f32 0.2, %v134_v55  ;;  %v1162_v11 = vadd.f32 %v788_v58, %v158_v60  ;;  %v812_v60 = vunpack.c.h.bf16 %v859_v41 }
  0x91   :  { %v149_v62 = vmul.f32 0.2, %v133_v56  ;;  %v1153_v63 = vadd.f32 %v787_v46, %v157_v54  ;;  %v65_v1 = vpop.permute.xlu1 %64 }
  0x92   :  { %v60_v2 = vpop.permute.xlu0 %59  ;;  %v128_v4 = vadd.f32 %v1120_v17, %v65_v1  ;;  %v166_v6 = vmax.f32 %v134_v55, %v150_v61 }
  0x93   :  { %v165_v3 = vmax.f32 %v133_v56, %v149_v62  ;;  %v127_v5 = vadd.f32 %v1120_v17, %v60_v2  ;;  %237 = vmax.xlane.f32.xlu0 %v1151_v57  ;;  %223 = vmax.xlane.f32.xlu1 %v1153_v63  ;;  %v934_v62 = vld [vmem:[%s1453_s2] sm:$0xff]  }
  0x94   :  { %v144_v9 = vmul.f32 0.2, %v128_v4  ;;  %v1173_v20 = vadd.f32 %v804_v7, %v166_v6  ;;  %883 = vmatprep.subr.bf16.mxu0 %v934_v62  ;;  %915 = vmatprep.subr.bf16.mxu1 %v934_v62 }
  0x95   :  { %v143_v10 = vmul.f32 0.2, %v127_v5  ;;  %v1164_v12 = vadd.f32 %v803_v59, %v165_v3  ;;  %v105_v14 = vpop.permute.xlu1 %104  ;;  %884 = vmatpush3.bf16.msra.mxu0 %v934_v62  ;;  %923 = vmatpush3.bf16.msra.mxu1 %v934_v62 }
  0x96   :  { %v100_v15 = vpop.permute.xlu0 %99  ;;  %v136_v18 = vadd.f32 %v1120_v17, %v105_v14  ;;  %v160_v23 = vmax.f32 %v128_v4, %v144_v9  ;;  %885 = vmatprep.subr.bf16.mxu0 %v935_v0  ;;  %916 = vmatprep.subr.bf16.mxu1 %v935_v0 }
  0x97   :  { %v159_v16 = vmax.f32 %v127_v5, %v143_v10  ;;  %v135_v19 = vadd.f32 %v1120_v17, %v100_v15  ;;  %225 = vmax.xlane.f32.xlu0 %v1162_v11  ;;  %239 = vmax.xlane.f32.xlu1 %v1164_v12 }
  0x98   :  { %v152_v24 = vmul.f32 0.2, %v136_v18  ;;  %v1184_v39 = vadd.f32 %v792_v21, %v160_v23 }
  0x99   :  { %v151_v25 = vmul.f32 0.2, %v135_v19  ;;  %v1175_v26 = vadd.f32 %v791_v8, %v159_v16  ;;  %v75_v28 = vpop.permute.xlu1 %74  ;;  %886 = vmatpush3.bf16.msra.mxu0 %v935_v0  ;;  %924 = vmatpush3.bf16.msra.mxu1 %v935_v0  ;;  %v938_v0 = vld [vmem:[%s1453_s2 + $0x20] sm:$0xff]  }
  0x9a   :  { %v70_v29 = vpop.permute.xlu0 %69  ;;  %v130_v31 = vadd.f32 %v1120_v17, %v75_v28  ;;  %v168_v33 = vmax.f32 %v136_v18, %v152_v24 }
  0x9b   :  { %v167_v30 = vmax.f32 %v135_v19, %v151_v25  ;;  %v129_v32 = vadd.f32 %v1120_v17, %v70_v29  ;;  %241 = vmax.xlane.f32.xlu0 %v1173_v20  ;;  %227 = vmax.xlane.f32.xlu1 %v1175_v26 }
  0x9c   :  { %v146_v36 = vmul.f32 0.2, %v130_v31  ;;  %v1195_v47 = vadd.f32 %v808_v34, %v168_v33 }
  0x9d   :  { %v145_v38 = vmul.f32 0.2, %v129_v32  ;;  %v1186_v40 = vadd.f32 %v807_v22, %v167_v30  ;;  %v115_v42 = vpop.permute.xlu1 %114 }
  0x9e   :  { %v110_v43 = vpop.permute.xlu0 %109  ;;  %v138_v45 = vadd.f32 %v1120_v17, %v115_v42  ;;  %v162_v52 = vmax.f32 %v130_v31, %v146_v36 }
  0x9f   :  { %v161_v44 = vmax.f32 %v129_v32, %v145_v38  ;;  %v137_v46 = vadd.f32 %v1120_v17, %v110_v43  ;;  %229 = vmax.xlane.f32.xlu0 %v1184_v39  ;;  %243 = vmax.xlane.f32.xlu1 %v1186_v40 }
  0xa0   :  { %v154_v53 = vmul.f32 0.2, %v138_v45  ;;  %v1201_v17 = vadd.f32 %v796_v48, %v162_v52  ;;  %v936_v48 = vld [vmem:[%s1453_s2 + $0x10] sm:$0xff]  }
  0xa1   :  { %v153_v54 = vmul.f32 0.2, %v137_v46  ;;  %v1197_v55 = vadd.f32 %v795_v35, %v161_v44  ;;  %887 = vmatprep.subr.bf16.mxu0 %v936_v48  ;;  %917 = vmatprep.subr.bf16.mxu1 %v936_v48 }
  0xa2   :  { %v170_v58 = vmax.f32 %v138_v45, %v154_v53  ;;  %888 = vmatpush3.bf16.msra.mxu0 %v936_v48  ;;  %925 = vmatpush3.bf16.msra.mxu1 %v936_v48 }
  0xa3   :  { %v169_v56 = vmax.f32 %v137_v46, %v153_v54  ;;  %245 = vmax.xlane.f32.xlu0 %v1195_v47  ;;  %231 = vmax.xlane.f32.xlu1 %v1197_v55 }
  0xa4   :  { %v1207_v61 = vadd.f32 %v812_v60, %v170_v58 }
  0xa5   :  { %v1203_v59 = vadd.f32 %v811_v51, %v169_v56 }
  0xa7   :  { %233 = vmax.xlane.f32.xlu0 %v1201_v17  ;;  %247 = vmax.xlane.f32.xlu1 %v1203_v59 }
  0xab   :  { %249 = vmax.xlane.f32.xlu0 %v1207_v61 }
 0x118   :  { %v220_v1 = vpop.xlane.xlu0 %219 }
 0x119   :  { %v251_v2 = vsub.f32 %v1132_v37, %v220_v1 }
 0x11b   :  { %v267_v3 = vmul.f32 1.442695, %v251_v2 }
 0x11c   :  { %v236_v4 = vpop.xlane.xlu0 %235  ;;  %v222_v5 = vpop.xlane.xlu1 %221 }
 0x11d   :  { %942 = vpow2.f32 %v267_v3  ;;  %v259_v6 = vsub.f32 %v1140_v49, %v236_v4  ;;  %v252_v7 = vsub.f32 %v1142_v50, %v222_v5  ;;  %v939_v3 = vld [vmem:[%s1453_s2 + $0x28] sm:$0xff]   ;;  %v940_v5 = vld [vmem:[%s1453_s2 + $0x30] sm:$0xff]  }
 0x11f   :  { %v283_v8 = vmul.f32 1.442695, %v259_v6  ;;  %v269_v9 = vmul.f32 1.442695, %v252_v7  ;;  %v941_v6 = vld [vmem:[%s1453_s2 + $0x38] sm:$0xff]  }
 0x120   :  { %v238_v10 = vpop.xlane.xlu0 %237  ;;  %v224_v13 = vpop.xlane.xlu1 %223 }
 0x121   :  { %944 = vpow2.f32 %v283_v8  ;;  %v260_v14 = vsub.f32 %v1151_v57, %v238_v10  ;;  %v253_v15 = vsub.f32 %v1153_v63, %v224_v13 }
 0x122   :  { %946 = vpow2.f32 %v269_v9 }
 0x123   :  { %v285_v16 = vmul.f32 1.442695, %v260_v14  ;;  %v271_v37 = vmul.f32 1.442695, %v253_v15 }
 0x124   :  { %v226_v18 = vpop.xlane.xlu0 %225  ;;  %v240_v19 = vpop.xlane.xlu1 %239 }
 0x125   :  { %948 = vpow2.f32 %v285_v16  ;;  %v254_v21 = vsub.f32 %v1162_v11, %v226_v18  ;;  %v261_v49 = vsub.f32 %v1164_v12, %v240_v19 }
 0x126   :  { %950 = vpow2.f32 %v271_v37 }
 0x127   :  { %v1223_v50 = vpop.eup %942  ;;  %v273_v22 = vmul.f32 1.442695, %v254_v21  ;;  %v287_v23 = vmul.f32 1.442695, %v261_v49 }
 0x128   :  { %299 = vadd.xlane.f32.xlu1 %v1223_v50  ;;  %v242_v57 = vpop.xlane.xlu0 %241  ;;  %v228_v24 = vpop.xlane.xlu1 %227 }
 0x129   :  { %952 = vpow2.f32 %v273_v22  ;;  %v262_v63 = vsub.f32 %v1173_v20, %v242_v57  ;;  %v255_v25 = vsub.f32 %v1175_v26, %v228_v24 }
 0x12a   :  { %954 = vpow2.f32 %v287_v23 }
 0x12b   :  { %v1228_v27 = vpop.eup %944  ;;  %v289_v11 = vmul.f32 1.442695, %v262_v63  ;;  %v275_v12 = vmul.f32 1.442695, %v255_v25 }
 0x12c   :  { %v1230_v28 = vpop.eup %946  ;;  %315 = vadd.xlane.f32.xlu1 %v1228_v27  ;;  %v230_v29 = vpop.xlane.xlu0 %229 }
 0x12d   :  { %956 = vpow2.f32 %v289_v11  ;;  %301 = vadd.xlane.f32.xlu0 %v1230_v28  ;;  %v244_v30 = vpop.xlane.xlu1 %243  ;;  %v256_v31 = vsub.f32 %v1184_v39, %v230_v29 }
 0x12e   :  { %958 = vpow2.f32 %v275_v12  ;;  %v263_v20 = vsub.f32 %v1186_v40, %v244_v30 }
 0x12f   :  { %v1236_v32 = vpop.eup %948  ;;  %v277_v26 = vmul.f32 1.442695, %v256_v31 }
 0x130   :  { %v1238_v33 = vpop.eup %950  ;;  %v291_v34 = vmul.f32 1.442695, %v263_v20  ;;  %v246_v35 = vpop.xlane.xlu0 %245 }
 0x131   :  { %960 = vpow2.f32 %v277_v26  ;;  %v232_v36 = vpop.xlane.xlu1 %231  ;;  %303 = vadd.xlane.f32.xlu1 %v1238_v33  ;;  %317 = vadd.xlane.f32.xlu0 %v1236_v32  ;;  %v264_v38 = vsub.f32 %v1195_v47, %v246_v35 }
 0x132   :  { %962 = vpow2.f32 %v291_v34  ;;  %v257_v39 = vsub.f32 %v1197_v55, %v232_v36 }
 0x133   :  { %v1244_v41 = vpop.eup %952  ;;  %v293_v40 = vmul.f32 1.442695, %v264_v38 }
 0x134   :  { %v1246_v42 = vpop.eup %954  ;;  %v279_v43 = vmul.f32 1.442695, %v257_v39  ;;  %v234_v44 = vpop.xlane.xlu0 %233 }
 0x135   :  { %964 = vpow2.f32 %v293_v40  ;;  %v248_v45 = vpop.xlane.xlu1 %247  ;;  %319 = vadd.xlane.f32.xlu1 %v1246_v42  ;;  %305 = vadd.xlane.f32.xlu0 %v1244_v41  ;;  %v258_v46 = vsub.f32 %v1201_v17, %v234_v44 }
 0x136   :  { %966 = vpow2.f32 %v279_v43  ;;  %v265_v47 = vsub.f32 %v1203_v59, %v248_v45  ;;  %v937_v59 = vld [vmem:[%s1453_s2 + $0x18] sm:$0xff]  }
 0x137   :  { %v1255_v51 = vpop.eup %956  ;;  %v281_v52 = vmul.f32 1.442695, %v258_v46  ;;  %889 = vmatprep.subr.bf16.mxu0 %v937_v59  ;;  %918 = vmatprep.subr.bf16.mxu1 %v937_v59 }
 0x138   :  { %v1257_v53 = vpop.eup %958  ;;  %v295_v54 = vmul.f32 1.442695, %v265_v47  ;;  %v250_v55 = vpop.xlane.xlu0 %249  ;;  %890 = vmatpush3.bf16.msra.mxu0 %v937_v59  ;;  %926 = vmatpush3.bf16.msra.mxu1 %v937_v59 }
 0x139   :  { %968 = vpow2.f32 %v281_v52  ;;  %307 = vadd.xlane.f32.xlu1 %v1257_v53  ;;  %321 = vadd.xlane.f32.xlu0 %v1255_v51  ;;  %v266_v56 = vsub.f32 %v1207_v61, %v250_v55 }
 0x13a   :  { %970 = vpow2.f32 %v295_v54  ;;  %891 = vmatprep.subr.bf16.mxu0 %v938_v0  ;;  %919 = vmatprep.subr.bf16.mxu1 %v938_v0 }
 0x13b   :  { %v1262_v58 = vpop.eup %960  ;;  %v297_v17 = vmul.f32 1.442695, %v266_v56 }
 0x13c   :  { %v1267_v60 = vpop.eup %962  ;;  %892 = vmatpush3.bf16.msra.mxu0 %v938_v0  ;;  %927 = vmatpush3.bf16.msra.mxu1 %v938_v0 }
 0x13d   :  { %972 = vpow2.f32 %v297_v17  ;;  %323 = vadd.xlane.f32.xlu1 %v1267_v60  ;;  %309 = vadd.xlane.f32.xlu0 %v1262_v58 }
 0x13e   :  { %893 = vmatprep.subr.bf16.mxu0 %v939_v3  ;;  %920 = vmatprep.subr.bf16.mxu1 %v939_v3 }
 0x13f   :  { %v1271_v61 = vpop.eup %964 }
 0x140   :  { %v1273_v62 = vpop.eup %966  ;;  %894 = vmatpush3.bf16.msra.mxu0 %v939_v3  ;;  %928 = vmatpush3.bf16.msra.mxu1 %v939_v3 }
 0x141   :  { %311 = vadd.xlane.f32.xlu1 %v1273_v62  ;;  %325 = vadd.xlane.f32.xlu0 %v1271_v61 }
 0x142   :  { %895 = vmatprep.subr.bf16.mxu0 %v940_v5  ;;  %921 = vmatprep.subr.bf16.mxu1 %v940_v5 }
 0x143   :  { %v1280_v1 = vpop.eup %968 }
 0x144   :  { %v1282_v2 = vpop.eup %970  ;;  %896 = vmatpush3.bf16.msra.mxu0 %v940_v5  ;;  %929 = vmatpush3.bf16.msra.mxu1 %v940_v5 }
 0x145   :  { %327 = vadd.xlane.f32.xlu1 %v1282_v2  ;;  %313 = vadd.xlane.f32.xlu0 %v1280_v1 }
 0x146   :  { %897 = vmatprep.subr.bf16.mxu0 %v941_v6  ;;  %922 = vmatprep.subr.bf16.mxu1 %v941_v6 }
 0x147   :  { %v1289_v4 = vpop.eup %972 }
 0x148   :  { %898 = vmatpush3.bf16.msra.mxu0 %v941_v6  ;;  %930 = vmatpush3.bf16.msra.mxu1 %v941_v6 }
 0x149   :  { %329 = vadd.xlane.f32.xlu0 %v1289_v4 }
 0x1b5   :  { %v300_v7 = vpop.xlane.xlu1 %299 }
 0x1b6   :  { %974 = vrcp.f32 %v300_v7 }
 0x1b9   :  { %v316_v8 = vpop.xlane.xlu1 %315 }
 0x1ba   :  { %v302_v9 = vpop.xlane.xlu0 %301 }
 0x1bb   :  { %976 = vrcp.f32 %v302_v9 }
 0x1bc   :  { %978 = vrcp.f32 %v316_v8 }
 0x1be   :  { %v304_v10 = vpop.xlane.xlu1 %303  ;;  %v318_v13 = vpop.xlane.xlu0 %317 }
 0x1bf   :  { %980 = vrcp.f32 %v318_v13 }
 0x1c0   :  { %982 = vrcp.f32 %v304_v10  ;;  %v975_v16 = vpop.eup %974 }
 0x1c1   :  { %v347_v21 = vmul.f32 %v975_v16, %v1223_v50 }
 0x1c2   :  { %v320_v14 = vpop.xlane.xlu1 %319  ;;  %v306_v15 = vpop.xlane.xlu0 %305 }
 0x1c3   :  { %984 = vrcp.f32 %v306_v15 }
 0x1c4   :  { %986 = vrcp.f32 %v320_v14 }
 0x1c5   :  { %v977_v37 = vpop.eup %976 }
 0x1c6   :  { %v308_v18 = vpop.xlane.xlu1 %307  ;;  %v322_v19 = vpop.xlane.xlu0 %321  ;;  %v348_v49 = vmul.f32 %v977_v37, %v1230_v28 }
 0x1c7   :  { %v979_v22 = vpop.eup %978  ;;  %988 = vrcp.f32 %v322_v19 }
 0x1c8   :  { %v363_v23 = vpack.c.bf16 %v348_v49, %v347_v21  ;;  %990 = vrcp.f32 %v308_v18  ;;  %v355_v25 = vmul.f32 %v979_v22, %v1228_v27 }
 0x1c9   :  { %v981_v57 = vpop.eup %980 }
 0x1ca   :  { %v324_v24 = vpop.xlane.xlu1 %323  ;;  %817 = vst [vmem:[%s1454_s5] sm:$0xff] %v363_v23   ;;  %899 = vmatprep.mubr.bf16.mxu0 %v363_v23  ;;  %v310_v63 = vpop.xlane.xlu0 %309  ;;  %v356_v11 = vmul.f32 %v981_v57, %v1236_v32 }
 0x1cb   :  { %v983_v12 = vpop.eup %982  ;;  %992 = vrcp.f32 %v310_v63 }
 0x1cc   :  { %v367_v50 = vpack.c.bf16 %v356_v11, %v355_v25  ;;  %994 = vrcp.f32 %v324_v24  ;;  %v349_v31 = vmul.f32 %v983_v12, %v1238_v33 }
 0x1cd   :  { %v985_v28 = vpop.eup %984 }
 0x1ce   :  { %v312_v29 = vpop.xlane.xlu1 %311  ;;  %v326_v30 = vpop.xlane.xlu0 %325  ;;  %863 = vst [vmem:[%s1454_s5 + $0x20] sm:$0xff] %v367_v50   ;;  %907 = vmatprep.mubr.bf16.mxu1 %v367_v50  ;;  %v350_v20 = vmul.f32 %v985_v28, %v1244_v41 }
 0x1cf   :  { %v987_v26 = vpop.eup %986  ;;  %996 = vrcp.f32 %v326_v30 }
 0x1d0   :  { %v364_v27 = vpack.c.bf16 %v350_v20, %v349_v31  ;;  %998 = vrcp.f32 %v312_v29  ;;  %v357_v36 = vmul.f32 %v987_v26, %v1246_v42 }
 0x1d1   :  { %v989_v32 = vpop.eup %988 }
 0x1d2   :  { %v328_v34 = vpop.xlane.xlu1 %327  ;;  %v314_v35 = vpop.xlane.xlu0 %313  ;;  %860 = vst [vmem:[%s1454_s5 + $0x8] sm:$0xff] %v364_v27   ;;  %900 = vmatmul.mubr.bf16.vlgmr.msra.gmra.mrb[0].mxu0 %v364_v27  ;;  %v358_v38 = vmul.f32 %v989_v32, %v1255_v51 }
 0x1d3   :  { %v991_v39 = vpop.eup %990  ;;  %1000 = vrcp.f32 %v314_v35 }
 0x1d4   :  { %1002 = vrcp.f32 %v328_v34  ;;  %v368_v33 = vpack.c.bf16 %v358_v38, %v357_v36  ;;  %v351_v43 = vmul.f32 %v991_v39, %v1257_v53 }
 0x1d5   :  { %v993_v41 = vpop.eup %992 }
 0x1d6   :  { %v330_v40 = vpop.xlane.xlu0 %329  ;;  %864 = vst [vmem:[%s1454_s5 + $0x28] sm:$0xff] %v368_v33   ;;  %908 = vmatmul.mubr.bf16.vlgmr.msra.gmra.mrb[0].mxu1 %v368_v33  ;;  %v352_v44 = vmul.f32 %v993_v41, %v1262_v58  ;;  %v995_v45 = vpop.eup %994 }
 0x1d7   :  { %1004 = vrcp.f32 %v330_v40  ;;  %v359_v47 = vmul.f32 %v995_v45, %v1267_v60 }
 0x1d8   :  { %v365_v42 = vpack.c.bf16 %v352_v44, %v351_v43 }
 0x1d9   :  { %v997_v46 = vpop.eup %996 }
 0x1da   :  { %861 = vst [vmem:[%s1454_s5 + $0x10] sm:$0xff] %v365_v42   ;;  %903 = vmatprep.mubr.bf16.mxu0 %v365_v42  ;;  %v360_v48 = vmul.f32 %v997_v46, %v1271_v61  ;;  %v999_v51 = vpop.eup %998 }
 0x1db   :  { %v353_v53 = vmul.f32 %v999_v51, %v1273_v62 }
 0x1dc   :  { %v369_v52 = vpack.c.bf16 %v360_v48, %v359_v47 }
 0x1dd   :  { %v1001_v54 = vpop.eup %1000 }
 0x1de   :  { %v1003_v55 = vpop.eup %1002  ;;  %865 = vst [vmem:[%s1454_s5 + $0x30] sm:$0xff] %v369_v52   ;;  %911 = vmatprep.mubr.bf16.mxu1 %v369_v52  ;;  %v354_v56 = vmul.f32 %v1001_v54, %v1280_v1 }
 0x1df   :  { %v361_v59 = vmul.f32 %v1003_v55, %v1282_v2 }
 0x1e0   :  { %v366_v17 = vpack.c.bf16 %v354_v56, %v353_v53 }
 0x1e1   :  { %v1005_v58 = vpop.eup %1004 }
 0x1e2   :  { %v362_v60 = vmul.f32 %v1005_v58, %v1289_v4  ;;  %862 = vst [vmem:[%s1454_s5 + $0x18] sm:$0xff] %v366_v17   ;;  %904 = vmatmul.mubr.bf16.gmra.mrb[4].mxu0 %v366_v17 }
 0x1e4   :  { %v370_v61 = vpack.c.bf16 %v362_v60, %v361_v59 }
 0x1e6   :  { %866 = vst [vmem:[%s1454_s5 + $0x38] sm:$0xff] %v370_v61   ;;  %912 = vmatmul.mubr.bf16.gmra.mrb[4].mxu1 %v370_v61 }
 0x2a5   :  { %v901_v62 = vpop.f32.mrb[0].mxu0 }
 0x2a6   :  { %v622_v0 = vmin.f32 %v901_v62, 0.0  ;;  %v541_v1 = vpop.f32.mrb[1].mxu0  ;;  %vm606_vm0 = vcmp.gt.f32.partialorder %v901_v62, 0.0 }
 0x2a7   :  { %v620_v3 = vmin.f32 %v541_v1, 0.0  ;;  %v902_v5 = vpop.f32.mrb[2].mxu0  ;;  %vm604_vm1 = vcmp.gt.f32.partialorder %v541_v1, 0.0 }
 0x2a8   :  { %v640_v6 = vmul.f32 1.442695, %v622_v0  ;;  %v623_v2 = vmin.f32 %v902_v5, 0.0  ;;  %v544_v7 = vpop.f32.mrb[3].mxu0  ;;  %vm607_vm2 = vcmp.gt.f32.partialorder %v902_v5, 0.0 }
 0x2a9   :  { %v636_v4 = vmul.f32 1.442695, %v620_v3  ;;  %v621_v8 = vmin.f32 %v544_v7, 0.0  ;;  %v1338_v9 = vpop.f32.mrb[0].mxu1  ;;  %vm605_vm3 = vcmp.gt.f32.partialorder %v544_v7, 0.0 }
 0x2aa   :  { %1006 = vpow2.f32 %v640_v6  ;;  %v642_v10 = vmul.f32 1.442695, %v623_v2  ;;  %v630_v13 = vmin.f32 %v1338_v9, 0.0  ;;  %v1341_v14 = vpop.f32.mrb[1].mxu1  ;;  %vm614_vm4 = vcmp.gt.f32.partialorder %v1338_v9, 0.0 }
 0x2ab   :  { %1008 = vpow2.f32 %v636_v4  ;;  %v638_v15 = vmul.f32 1.442695, %v621_v8  ;;  %v628_v16 = vmin.f32 %v1341_v14, 0.0  ;;  %v1344_v37 = vpop.f32.mrb[2].mxu1  ;;  %vm612_vm5 = vcmp.gt.f32.partialorder %v1341_v14, 0.0 }
 0x2ac   :  { %1010 = vpow2.f32 %v642_v10  ;;  %v656_v18 = vmul.f32 1.442695, %v630_v13  ;;  %v631_v19 = vmin.f32 %v1344_v37, 0.0  ;;  %v1347_v21 = vpop.f32.mrb[3].mxu1  ;;  %vm615_vm6 = vcmp.gt.f32.partialorder %v1344_v37, 0.0 }
 0x2ad   :  { %1012 = vpow2.f32 %v638_v15  ;;  %v652_v49 = vmul.f32 1.442695, %v628_v16  ;;  %v629_v22 = vmin.f32 %v1347_v21, 0.0  ;;  %vm613_vm7 = vcmp.gt.f32.partialorder %v1347_v21, 0.0 }
 0x2ae   :  { %1014 = vpow2.f32 %v656_v18  ;;  %v658_v23 = vmul.f32 1.442695, %v631_v19 }
 0x2af   :  { %1016 = vpow2.f32 %v652_v49  ;;  %v654_v57 = vmul.f32 1.442695, %v629_v22 }
 0x2b0   :  { %1018 = vpow2.f32 %v658_v23 }
 0x2b1   :  { %1020 = vpow2.f32 %v654_v57 }
 0x2b4   :  { %v1007_v24 = vpop.eup %1006 }
 0x2b5   :  { %v1009_v63 = vpop.eup %1008  ;;  %v751_v25 = vadd.f32 -1.0, %v1007_v24  ;;  %v1350_v11 = vpop.f32.mrb[4].mxu0 }
 0x2b6   :  { %v1011_v12 = vpop.eup %1010  ;;  %v749_v50 = vadd.f32 -1.0, %v1009_v63  ;;  %v626_v28 = vmin.f32 %v1350_v11, 0.0  ;;  %v1353_v29 = vpop.f32.mrb[5].mxu0  ;;  %vm610_vm8 = vcmp.gt.f32.partialorder %v1350_v11, 0.0 }
 0x2b7   :  { %v1013_v30 = vpop.eup %1012  ;;  %v686_v31 = vsel %vm606_vm0, %v901_v62, %v751_v25  ;;  %v752_v20 = vadd.f32 -1.0, %v1011_v12  ;;  %v624_v26 = vmin.f32 %v1353_v29, 0.0  ;;  %v1356_v27 = vpop.f32.mrb[6].mxu0  ;;  %vm608_vm9 = vcmp.gt.f32.partialorder %v1353_v29, 0.0 }
 0x2b8   :  { %v1015_v32 = vpop.eup %1014  ;;  %702 = vst [vmem:[%s1455_s4 + $0x10] sm:$0xff] %v686_v31  ;;  %v684_v34 = vsel %vm604_vm1, %v541_v1, %v749_v50  ;;  %v750_v35 = vadd.f32 -1.0, %v1013_v30  ;;  %v648_v36 = vmul.f32 1.442695, %v626_v28  ;;  %v1362_v38 = vpop.f32.mrb[7].mxu0  ;;  %v627_v44 = vmin.f32 %v1356_v27, 0.0 }
 0x2b9   :  { %v1364_v39 = vpop.f32.mrb[4].mxu1  ;;  %v1017_v33 = vpop.eup %1016  ;;  %700 = vst [vmem:[%s1455_s4] sm:$0xff] %v684_v34  ;;  %v687_v41 = vsel %vm607_vm2, %v902_v5, %v752_v20  ;;  %v759_v40 = vadd.f32 -1.0, %v1015_v32  ;;  %v644_v43 = vmul.f32 1.442695, %v624_v26  ;;  %v625_v17 = vmin.f32 %v1362_v38, 0.0 }
 0x2ba   :  { %v1371_v45 = vpop.f32.mrb[5].mxu1  ;;  %v1019_v42 = vpop.eup %1018  ;;  %703 = vst [vmem:[%s1455_s4 + $0x18] sm:$0xff] %v687_v41  ;;  %v685_v46 = vsel %vm605_vm3, %v544_v7, %v750_v35  ;;  %v757_v47 = vadd.f32 -1.0, %v1017_v33  ;;  %1022 = vpow2.f32 %v648_v36  ;;  %v650_v55 = vmul.f32 1.442695, %v627_v44 }
 0x2bb   :  { %v1378_v48 = vpop.f32.mrb[6].mxu1  ;;  %v1021_v51 = vpop.eup %1020  ;;  %701 = vst [vmem:[%s1455_s4 + $0x8] sm:$0xff] %v685_v46  ;;  %v694_v52 = vsel %vm614_vm4, %v1338_v9, %v759_v40  ;;  %v760_v54 = vadd.f32 -1.0, %v1019_v42  ;;  %1024 = vpow2.f32 %v644_v43  ;;  %v634_v60 = vmin.f32 %v1364_v39, 0.0 }
 0x2bc   :  { %v1386_v53 = vpop.f32.mrb[7].mxu1  ;;  %710 = vst [vmem:[%s1455_s4 + $0x50] sm:$0xff] %v694_v52  ;;  %v692_v56 = vsel %vm612_vm5, %v1341_v14, %v757_v47  ;;  %v758_v58 = vadd.f32 -1.0, %v1021_v51  ;;  %1026 = vpow2.f32 %v650_v55  ;;  %v646_v62 = vmul.f32 1.442695, %v625_v17 }
 0x2bd   :  { %708 = vst [vmem:[%s1455_s4 + $0x40] sm:$0xff] %v692_v56  ;;  %v695_v59 = vsel %vm615_vm6, %v1344_v37, %v760_v54  ;;  %v632_v0 = vmin.f32 %v1371_v45, 0.0  ;;  %v664_v1 = vmul.f32 1.442695, %v634_v60  ;;  %v635_v3 = vmin.f32 %v1378_v48, 0.0 }
 0x2be   :  { %711 = vst [vmem:[%s1455_s4 + $0x58] sm:$0xff] %v695_v59  ;;  %v693_v61 = vsel %vm613_vm7, %v1347_v21, %v758_v58  ;;  %v633_v5 = vmin.f32 %v1386_v53, 0.0  ;;  %1028 = vpow2.f32 %v646_v62  ;;  %vm611_vm10 = vcmp.gt.f32.partialorder %v1356_v27, 0.0 }
 0x2bf   :  { %709 = vst [vmem:[%s1455_s4 + $0x48] sm:$0xff] %v693_v61  ;;  %v660_v6 = vmul.f32 1.442695, %v632_v0  ;;  %1030 = vpow2.f32 %v664_v1  ;;  %v666_v2 = vmul.f32 1.442695, %v635_v3  ;;  %vm609_vm11 = vcmp.gt.f32.partialorder %v1362_v38, 0.0 }
 0x2c0   :  { %v662_v7 = vmul.f32 1.442695, %v633_v5  ;;  %vm618_vm12 = vcmp.gt.f32.partialorder %v1364_v39, 0.0  ;;  %vm616_vm13 = vcmp.gt.f32.partialorder %v1371_v45, 0.0  ;;  %vm619_vm14 = vcmp.gt.f32.partialorder %v1378_v48, 0.0 }
 0x2c1   :  { %1032 = vpow2.f32 %v660_v6  ;;  %vm617_vm15 = vcmp.gt.f32.partialorder %v1386_v53, 0.0 }
 0x2c2   :  { %1034 = vpow2.f32 %v666_v2 }
 0x2c3   :  { %1036 = vpow2.f32 %v662_v7 }
 0x2c4   :  { %v1023_v4 = vpop.eup %1022 }
 0x2c5   :  { %v1025_v8 = vpop.eup %1024  ;;  %v755_v9 = vadd.f32 -1.0, %v1023_v4 }
 0x2c6   :  { %v753_v10 = vadd.f32 -1.0, %v1025_v8  ;;  %v1027_v13 = vpop.eup %1026 }
 0x2c7   :  { %v690_v14 = vsel %vm610_vm8, %v1350_v11, %v755_v9  ;;  %v756_v16 = vadd.f32 -1.0, %v1027_v13 }
 0x2c8   :  { %706 = vst [vmem:[%s1455_s4 + $0x30] sm:$0xff] %v690_v14  ;;  %v688_v15 = vsel %vm608_vm9, %v1353_v29, %v753_v10  ;;  %v1029_v37 = vpop.eup %1028 }
 0x2c9   :  { %704 = vst [vmem:[%s1455_s4 + $0x20] sm:$0xff] %v688_v15  ;;  %v691_v18 = vsel %vm611_vm10, %v1356_v27, %v756_v16  ;;  %v1031_v19 = vpop.eup %1030  ;;  %v754_v21 = vadd.f32 -1.0, %v1029_v37 }
 0x2ca   :  { %707 = vst [vmem:[%s1455_s4 + $0x38] sm:$0xff] %v691_v18  ;;  %v763_v22 = vadd.f32 -1.0, %v1031_v19 }
 0x2cb   :  { %v1033_v49 = vpop.eup %1032  ;;  %v689_v57 = vsel %vm609_vm11, %v1362_v38, %v754_v21 }
 0x2cc   :  { %v1035_v23 = vpop.eup %1034  ;;  %v761_v24 = vadd.f32 -1.0, %v1033_v49  ;;  %705 = vst [vmem:[%s1455_s4 + $0x28] sm:$0xff] %v689_v57  ;;  %v698_v25 = vsel %vm618_vm12, %v1364_v39, %v763_v22 }
 0x2cd   :  { %v1037_v63 = vpop.eup %1036  ;;  %v764_v11 = vadd.f32 -1.0, %v1035_v23  ;;  %714 = vst [vmem:[%s1455_s4 + $0x70] sm:$0xff] %v698_v25 }
 0x2ce   :  { %v696_v12 = vsel %vm616_vm13, %v1371_v45, %v761_v24  ;;  %v762_v50 = vadd.f32 -1.0, %v1037_v63 }
 0x2cf   :  { %712 = vst [vmem:[%s1455_s4 + $0x60] sm:$0xff] %v696_v12  ;;  %v699_v28 = vsel %vm619_vm14, %v1378_v48, %v764_v11 }
 0x2d0   :  { %715 = vst [vmem:[%s1455_s4 + $0x78] sm:$0xff] %v699_v28  ;;  %v697_v29 = vsel %vm617_vm15, %v1386_v53, %v762_v50 }
 0x2d1   :  { %713 = vst [vmem:[%s1455_s4 + $0x68] sm:$0xff] %v697_v29 }

// kernel: gat_forward.7
= control target key start
LH: loop header
LB: loop body
LE: loop exit
PB: predicated region body
PF: predicated region fallthrough
CT: control target
= control target key end

     0   :  { %v1054_v0 = vmov 0   ;;  %s1402_s0 = inlined_call_operand.vmem [shape: f32[128,1], index: 0, kind: input, shape index: {}]   ;;  %s1403_s1 = inlined_call_operand.vmem [shape: f32[1,128], index: 1, kind: input, shape index: {}]   ;;  %s1404_s3 = inlined_call_operand.vmem [shape: bf16[128,128], index: 3, kind: input, shape index: {}]   ;;  %s1405_s2 = inlined_call_operand.vmem [shape: bf16[128,128], index: 2, kind: input, shape index: {}]   ;;  %s1406_s5 = inlined_call_operand.vmem [shape: bf16[128,128], index: 5, kind: output, shape index: {1}]   ;;  %s1407_s4 = inlined_call_operand.vmem [shape: f32[128,128], index: 4, kind: output, shape index: {0}]  }
   0x1   :  { %917 = vset.pattern.permute.xlu1 %v1054_v0  ;;  %916 = vset.pattern.permute.xlu0 %v1054_v0  ;;  %v28_v1 = vld [vmem:[%s1402_s0 + $0x40] sm:$0xff]  ;;  %v29_v3 = vld [vmem:[%s1402_s0 + $0x48] sm:$0xff]  ;;  %v23_v5 = vld [vmem:[%s1402_s0 + $0x18] sm:$0xff] }
   0x2   :  { %v20_v2 = vld [vmem:[%s1402_s0] sm:$0xff]  ;;  %79 = vperm.xlu1 %917, %v28_v1   ;;  %v21_v4 = vld [vmem:[%s1402_s0 + $0x8] sm:$0xff]  ;;  %v22_v6 = vld [vmem:[%s1402_s0 + $0x10] sm:$0xff] }
   0x3   :  { %39 = vperm.xlu0 %916, %v20_v2   ;;  %v31_v7 = vld [vmem:[%s1402_s0 + $0x58] sm:$0xff]  ;;  %v30_v8 = vld [vmem:[%s1402_s0 + $0x50] sm:$0xff]  ;;  %v25_v9 = vld [vmem:[%s1402_s0 + $0x28] sm:$0xff] }
   0x4   :  { %v24_v10 = vld [vmem:[%s1402_s0 + $0x20] sm:$0xff]  ;;  %v33_v11 = vld [vmem:[%s1402_s0 + $0x68] sm:$0xff]  ;;  %v27_v13 = vld [vmem:[%s1402_s0 + $0x38] sm:$0xff] }
   0x5   :  { %v32_v12 = vld [vmem:[%s1402_s0 + $0x60] sm:$0xff]  ;;  %v26_v14 = vld [vmem:[%s1402_s0 + $0x30] sm:$0xff]  ;;  %v35_v15 = vld [vmem:[%s1402_s0 + $0x78] sm:$0xff] }
   0x6   :  { %84 = vperm.xlu1 %917, %v29_v3   ;;  %v34_v16 = vld [vmem:[%s1402_s0 + $0x70] sm:$0xff]  ;;  %v1136_v17 = vld [vmem:[%s1403_s1] ss:$0 sm:$0xff]  ;;  %v837_v38 = vld [vmem:[%s1404_s3 + $0x8] sm:$0xff]  }
   0x7   :  { %44 = vperm.xlu0 %916, %v21_v4   ;;  %v766_v20 = vld [vmem:[%s1404_s3] sm:$0xff]   ;;  %v771_v46 = vunpack.c.l.bf16 %v837_v38  ;;  %v841_v51 = vld [vmem:[%s1404_s3 + $0x28] sm:$0xff]   ;;  %v772_v58 = vunpack.c.h.bf16 %v837_v38  ;;  %v838_v0 = vld [vmem:[%s1404_s3 + $0x10] sm:$0xff]  }
   0x8   :  { %v767_v25 = vunpack.c.l.bf16 %v766_v20  ;;  %v840_v26 = vld [vmem:[%s1404_s3 + $0x20] sm:$0xff]   ;;  %v768_v33 = vunpack.c.h.bf16 %v766_v20  ;;  %v787_v59 = vunpack.c.l.bf16 %v841_v51 }
   0x9   :  { %v783_v32 = vunpack.c.l.bf16 %v840_v26  ;;  %v784_v45 = vunpack.c.h.bf16 %v840_v26 }
   0xa   :  { %54 = vperm.xlu1 %917, %v23_v5  }
   0xb   :  { %49 = vperm.xlu0 %916, %v22_v6  }
   0xe   :  { %94 = vperm.xlu1 %917, %v31_v7   ;;  %v788_v7 = vunpack.c.h.bf16 %v841_v51 }
   0xf   :  { %89 = vperm.xlu0 %916, %v30_v8   ;;  %v775_v8 = vunpack.c.l.bf16 %v838_v0 }
  0x12   :  { %64 = vperm.xlu1 %917, %v25_v9  }
  0x13   :  { %59 = vperm.xlu0 %916, %v24_v10  }
  0x16   :  { %104 = vperm.xlu1 %917, %v33_v11  }
  0x17   :  { %99 = vperm.xlu0 %916, %v32_v12  }
  0x1a   :  { %74 = vperm.xlu1 %917, %v27_v13   ;;  %v842_v13 = vld [vmem:[%s1404_s3 + $0x30] sm:$0xff]  }
  0x1b   :  { %69 = vperm.xlu0 %916, %v26_v14  }
  0x1e   :  { %114 = vperm.xlu1 %917, %v35_v15  }
  0x1f   :  { %109 = vperm.xlu0 %916, %v34_v16  }
  0x81   :  { %v80_v18 = vpop.permute.xlu1 %79 }
  0x82   :  { %v40_v19 = vpop.permute.xlu0 %39  ;;  %v131_v21 = vadd.f32 %v1136_v17, %v80_v18 }
  0x83   :  { %v123_v22 = vadd.f32 %v1136_v17, %v40_v19 }
  0x84   :  { %v147_v23 = vmul.f32 0.2, %v131_v21 }
  0x85   :  { %v139_v24 = vmul.f32 0.2, %v123_v22  ;;  %v85_v27 = vpop.permute.xlu1 %84 }
  0x86   :  { %v45_v28 = vpop.permute.xlu0 %44  ;;  %v132_v30 = vadd.f32 %v1136_v17, %v85_v27  ;;  %v163_v34 = vmax.f32 %v131_v21, %v147_v23  ;;  %v776_v21 = vunpack.c.h.bf16 %v838_v0  ;;  %v839_v27 = vld [vmem:[%s1404_s3 + $0x18] sm:$0xff]   ;;  %v919_v0 = vld [vmem:[%s1405_s2 + $0x8] sm:$0xff]  }
  0x87   :  { %v155_v29 = vmax.f32 %v123_v22, %v139_v24  ;;  %v124_v31 = vadd.f32 %v1136_v17, %v45_v28  ;;  %v791_v22 = vunpack.c.l.bf16 %v842_v13 }
  0x88   :  { %v148_v35 = vmul.f32 0.2, %v132_v30  ;;  %v1156_v49 = vadd.f32 %v783_v32, %v163_v34  ;;  %v792_v34 = vunpack.c.h.bf16 %v842_v13 }
  0x89   :  { %v140_v36 = vmul.f32 0.2, %v124_v31  ;;  %v1148_v37 = vadd.f32 %v767_v25, %v155_v29  ;;  %v55_v39 = vpop.permute.xlu1 %54 }
  0x8a   :  { %v50_v40 = vpop.permute.xlu0 %49  ;;  %v126_v42 = vadd.f32 %v1136_v17, %v55_v39  ;;  %v164_v44 = vmax.f32 %v132_v30, %v148_v35  ;;  %v779_v35 = vunpack.c.l.bf16 %v839_v27 }
  0x8b   :  { %v156_v41 = vmax.f32 %v124_v31, %v140_v36  ;;  %v125_v43 = vadd.f32 %v1136_v17, %v50_v40  ;;  %219 = vmax.xlane.f32.xlu0 %v1148_v37 }
  0x8c   :  { %v142_v47 = vmul.f32 0.2, %v126_v42  ;;  %v1167_v57 = vadd.f32 %v784_v45, %v164_v44 }
  0x8d   :  { %v141_v48 = vmul.f32 0.2, %v125_v43  ;;  %v1158_v50 = vadd.f32 %v768_v33, %v156_v41  ;;  %v95_v52 = vpop.permute.xlu1 %94  ;;  %v843_v41 = vld [vmem:[%s1404_s3 + $0x38] sm:$0xff]  }
  0x8e   :  { %v90_v53 = vpop.permute.xlu0 %89  ;;  %v134_v55 = vadd.f32 %v1136_v17, %v95_v52  ;;  %v158_v60 = vmax.f32 %v126_v42, %v142_v47  ;;  %v795_v51 = vunpack.c.l.bf16 %v843_v41 }
  0x8f   :  { %v157_v54 = vmax.f32 %v125_v43, %v141_v48  ;;  %v133_v56 = vadd.f32 %v1136_v17, %v90_v53  ;;  %235 = vmax.xlane.f32.xlu0 %v1156_v49  ;;  %221 = vmax.xlane.f32.xlu1 %v1158_v50  ;;  %v780_v48 = vunpack.c.h.bf16 %v839_v27 }
  0x90   :  { %v150_v61 = vmul.f32 0.2, %v134_v55  ;;  %v1178_v11 = vadd.f32 %v772_v58, %v158_v60  ;;  %v796_v60 = vunpack.c.h.bf16 %v843_v41 }
  0x91   :  { %v149_v62 = vmul.f32 0.2, %v133_v56  ;;  %v1169_v63 = vadd.f32 %v771_v46, %v157_v54  ;;  %v65_v1 = vpop.permute.xlu1 %64 }
  0x92   :  { %v60_v2 = vpop.permute.xlu0 %59  ;;  %v128_v4 = vadd.f32 %v1136_v17, %v65_v1  ;;  %v166_v6 = vmax.f32 %v134_v55, %v150_v61 }
  0x93   :  { %v165_v3 = vmax.f32 %v133_v56, %v149_v62  ;;  %v127_v5 = vadd.f32 %v1136_v17, %v60_v2  ;;  %237 = vmax.xlane.f32.xlu0 %v1167_v57  ;;  %223 = vmax.xlane.f32.xlu1 %v1169_v63  ;;  %v918_v62 = vld [vmem:[%s1405_s2] sm:$0xff]  }
  0x94   :  { %v144_v9 = vmul.f32 0.2, %v128_v4  ;;  %v1189_v20 = vadd.f32 %v788_v7, %v166_v6  ;;  %867 = vmatprep.subr.bf16.mxu0 %v918_v62  ;;  %899 = vmatprep.subr.bf16.mxu1 %v918_v62 }
  0x95   :  { %v143_v10 = vmul.f32 0.2, %v127_v5  ;;  %v1180_v12 = vadd.f32 %v787_v59, %v165_v3  ;;  %v105_v14 = vpop.permute.xlu1 %104  ;;  %868 = vmatpush3.bf16.msra.mxu0 %v918_v62  ;;  %907 = vmatpush3.bf16.msra.mxu1 %v918_v62 }
  0x96   :  { %v100_v15 = vpop.permute.xlu0 %99  ;;  %v136_v18 = vadd.f32 %v1136_v17, %v105_v14  ;;  %v160_v23 = vmax.f32 %v128_v4, %v144_v9  ;;  %869 = vmatprep.subr.bf16.mxu0 %v919_v0  ;;  %900 = vmatprep.subr.bf16.mxu1 %v919_v0 }
  0x97   :  { %v159_v16 = vmax.f32 %v127_v5, %v143_v10  ;;  %v135_v19 = vadd.f32 %v1136_v17, %v100_v15  ;;  %225 = vmax.xlane.f32.xlu0 %v1178_v11  ;;  %239 = vmax.xlane.f32.xlu1 %v1180_v12 }
  0x98   :  { %v152_v24 = vmul.f32 0.2, %v136_v18  ;;  %v1200_v39 = vadd.f32 %v776_v21, %v160_v23 }
  0x99   :  { %v151_v25 = vmul.f32 0.2, %v135_v19  ;;  %v1191_v26 = vadd.f32 %v775_v8, %v159_v16  ;;  %v75_v28 = vpop.permute.xlu1 %74  ;;  %870 = vmatpush3.bf16.msra.mxu0 %v919_v0  ;;  %908 = vmatpush3.bf16.msra.mxu1 %v919_v0  ;;  %v922_v0 = vld [vmem:[%s1405_s2 + $0x20] sm:$0xff]  }
  0x9a   :  { %v70_v29 = vpop.permute.xlu0 %69  ;;  %v130_v31 = vadd.f32 %v1136_v17, %v75_v28  ;;  %v168_v33 = vmax.f32 %v136_v18, %v152_v24 }
  0x9b   :  { %v167_v30 = vmax.f32 %v135_v19, %v151_v25  ;;  %v129_v32 = vadd.f32 %v1136_v17, %v70_v29  ;;  %241 = vmax.xlane.f32.xlu0 %v1189_v20  ;;  %227 = vmax.xlane.f32.xlu1 %v1191_v26 }
  0x9c   :  { %v146_v36 = vmul.f32 0.2, %v130_v31  ;;  %v1211_v47 = vadd.f32 %v792_v34, %v168_v33 }
  0x9d   :  { %v145_v38 = vmul.f32 0.2, %v129_v32  ;;  %v1202_v40 = vadd.f32 %v791_v22, %v167_v30  ;;  %v115_v42 = vpop.permute.xlu1 %114 }
  0x9e   :  { %v110_v43 = vpop.permute.xlu0 %109  ;;  %v138_v45 = vadd.f32 %v1136_v17, %v115_v42  ;;  %v162_v52 = vmax.f32 %v130_v31, %v146_v36 }
  0x9f   :  { %v161_v44 = vmax.f32 %v129_v32, %v145_v38  ;;  %v137_v46 = vadd.f32 %v1136_v17, %v110_v43  ;;  %229 = vmax.xlane.f32.xlu0 %v1200_v39  ;;  %243 = vmax.xlane.f32.xlu1 %v1202_v40 }
  0xa0   :  { %v154_v53 = vmul.f32 0.2, %v138_v45  ;;  %v1217_v17 = vadd.f32 %v780_v48, %v162_v52  ;;  %v920_v48 = vld [vmem:[%s1405_s2 + $0x10] sm:$0xff]  }
  0xa1   :  { %v153_v54 = vmul.f32 0.2, %v137_v46  ;;  %v1213_v55 = vadd.f32 %v779_v35, %v161_v44  ;;  %871 = vmatprep.subr.bf16.mxu0 %v920_v48  ;;  %901 = vmatprep.subr.bf16.mxu1 %v920_v48 }
  0xa2   :  { %v170_v58 = vmax.f32 %v138_v45, %v154_v53  ;;  %872 = vmatpush3.bf16.msra.mxu0 %v920_v48  ;;  %909 = vmatpush3.bf16.msra.mxu1 %v920_v48 }
  0xa3   :  { %v169_v56 = vmax.f32 %v137_v46, %v153_v54  ;;  %245 = vmax.xlane.f32.xlu0 %v1211_v47  ;;  %231 = vmax.xlane.f32.xlu1 %v1213_v55 }
  0xa4   :  { %v1223_v61 = vadd.f32 %v796_v60, %v170_v58 }
  0xa5   :  { %v1219_v59 = vadd.f32 %v795_v51, %v169_v56 }
  0xa7   :  { %233 = vmax.xlane.f32.xlu0 %v1217_v17  ;;  %247 = vmax.xlane.f32.xlu1 %v1219_v59 }
  0xab   :  { %249 = vmax.xlane.f32.xlu0 %v1223_v61 }
 0x118   :  { %v220_v1 = vpop.xlane.xlu0 %219 }
 0x119   :  { %v251_v2 = vsub.f32 %v1148_v37, %v220_v1 }
 0x11b   :  { %v267_v3 = vmul.f32 1.442695, %v251_v2 }
 0x11c   :  { %v236_v4 = vpop.xlane.xlu0 %235  ;;  %v222_v5 = vpop.xlane.xlu1 %221 }
 0x11d   :  { %926 = vpow2.f32 %v267_v3  ;;  %v259_v6 = vsub.f32 %v1156_v49, %v236_v4  ;;  %v252_v7 = vsub.f32 %v1158_v50, %v222_v5  ;;  %v923_v3 = vld [vmem:[%s1405_s2 + $0x28] sm:$0xff]   ;;  %v924_v5 = vld [vmem:[%s1405_s2 + $0x30] sm:$0xff]  }
 0x11f   :  { %v283_v8 = vmul.f32 1.442695, %v259_v6  ;;  %v269_v9 = vmul.f32 1.442695, %v252_v7  ;;  %v925_v6 = vld [vmem:[%s1405_s2 + $0x38] sm:$0xff]  }
 0x120   :  { %v238_v10 = vpop.xlane.xlu0 %237  ;;  %v224_v13 = vpop.xlane.xlu1 %223 }
 0x121   :  { %928 = vpow2.f32 %v283_v8  ;;  %v260_v14 = vsub.f32 %v1167_v57, %v238_v10  ;;  %v253_v15 = vsub.f32 %v1169_v63, %v224_v13 }
 0x122   :  { %930 = vpow2.f32 %v269_v9 }
 0x123   :  { %v285_v16 = vmul.f32 1.442695, %v260_v14  ;;  %v271_v37 = vmul.f32 1.442695, %v253_v15 }
 0x124   :  { %v226_v18 = vpop.xlane.xlu0 %225  ;;  %v240_v19 = vpop.xlane.xlu1 %239 }
 0x125   :  { %932 = vpow2.f32 %v285_v16  ;;  %v254_v21 = vsub.f32 %v1178_v11, %v226_v18  ;;  %v261_v49 = vsub.f32 %v1180_v12, %v240_v19 }
 0x126   :  { %934 = vpow2.f32 %v271_v37 }
 0x127   :  { %v1239_v50 = vpop.eup %926  ;;  %v273_v22 = vmul.f32 1.442695, %v254_v21  ;;  %v287_v23 = vmul.f32 1.442695, %v261_v49 }
 0x128   :  { %299 = vadd.xlane.f32.xlu1 %v1239_v50  ;;  %v242_v57 = vpop.xlane.xlu0 %241  ;;  %v228_v24 = vpop.xlane.xlu1 %227 }
 0x129   :  { %936 = vpow2.f32 %v273_v22  ;;  %v262_v63 = vsub.f32 %v1189_v20, %v242_v57  ;;  %v255_v25 = vsub.f32 %v1191_v26, %v228_v24 }
 0x12a   :  { %938 = vpow2.f32 %v287_v23 }
 0x12b   :  { %v1244_v27 = vpop.eup %928  ;;  %v289_v11 = vmul.f32 1.442695, %v262_v63  ;;  %v275_v12 = vmul.f32 1.442695, %v255_v25 }
 0x12c   :  { %v1246_v28 = vpop.eup %930  ;;  %315 = vadd.xlane.f32.xlu1 %v1244_v27  ;;  %v230_v29 = vpop.xlane.xlu0 %229 }
 0x12d   :  { %940 = vpow2.f32 %v289_v11  ;;  %301 = vadd.xlane.f32.xlu0 %v1246_v28  ;;  %v244_v30 = vpop.xlane.xlu1 %243  ;;  %v256_v31 = vsub.f32 %v1200_v39, %v230_v29 }
 0x12e   :  { %942 = vpow2.f32 %v275_v12  ;;  %v263_v20 = vsub.f32 %v1202_v40, %v244_v30 }
 0x12f   :  { %v1252_v32 = vpop.eup %932  ;;  %v277_v26 = vmul.f32 1.442695, %v256_v31 }
 0x130   :  { %v1254_v33 = vpop.eup %934  ;;  %v291_v34 = vmul.f32 1.442695, %v263_v20  ;;  %v246_v35 = vpop.xlane.xlu0 %245 }
 0x131   :  { %944 = vpow2.f32 %v277_v26  ;;  %v232_v36 = vpop.xlane.xlu1 %231  ;;  %303 = vadd.xlane.f32.xlu1 %v1254_v33  ;;  %317 = vadd.xlane.f32.xlu0 %v1252_v32  ;;  %v264_v38 = vsub.f32 %v1211_v47, %v246_v35 }
 0x132   :  { %946 = vpow2.f32 %v291_v34  ;;  %v257_v39 = vsub.f32 %v1213_v55, %v232_v36 }
 0x133   :  { %v1260_v41 = vpop.eup %936  ;;  %v293_v40 = vmul.f32 1.442695, %v264_v38 }
 0x134   :  { %v1262_v42 = vpop.eup %938  ;;  %v279_v43 = vmul.f32 1.442695, %v257_v39  ;;  %v234_v44 = vpop.xlane.xlu0 %233 }
 0x135   :  { %948 = vpow2.f32 %v293_v40  ;;  %v248_v45 = vpop.xlane.xlu1 %247  ;;  %319 = vadd.xlane.f32.xlu1 %v1262_v42  ;;  %305 = vadd.xlane.f32.xlu0 %v1260_v41  ;;  %v258_v46 = vsub.f32 %v1217_v17, %v234_v44 }
 0x136   :  { %950 = vpow2.f32 %v279_v43  ;;  %v265_v47 = vsub.f32 %v1219_v59, %v248_v45  ;;  %v921_v59 = vld [vmem:[%s1405_s2 + $0x18] sm:$0xff]  }
 0x137   :  { %v1271_v51 = vpop.eup %940  ;;  %v281_v52 = vmul.f32 1.442695, %v258_v46  ;;  %873 = vmatprep.subr.bf16.mxu0 %v921_v59  ;;  %902 = vmatprep.subr.bf16.mxu1 %v921_v59 }
 0x138   :  { %v1273_v53 = vpop.eup %942  ;;  %v295_v54 = vmul.f32 1.442695, %v265_v47  ;;  %v250_v55 = vpop.xlane.xlu0 %249  ;;  %874 = vmatpush3.bf16.msra.mxu0 %v921_v59  ;;  %910 = vmatpush3.bf16.msra.mxu1 %v921_v59 }
 0x139   :  { %952 = vpow2.f32 %v281_v52  ;;  %307 = vadd.xlane.f32.xlu1 %v1273_v53  ;;  %321 = vadd.xlane.f32.xlu0 %v1271_v51  ;;  %v266_v56 = vsub.f32 %v1223_v61, %v250_v55 }
 0x13a   :  { %954 = vpow2.f32 %v295_v54  ;;  %875 = vmatprep.subr.bf16.mxu0 %v922_v0  ;;  %903 = vmatprep.subr.bf16.mxu1 %v922_v0 }
 0x13b   :  { %v1278_v58 = vpop.eup %944  ;;  %v297_v17 = vmul.f32 1.442695, %v266_v56 }
 0x13c   :  { %v1283_v60 = vpop.eup %946  ;;  %876 = vmatpush3.bf16.msra.mxu0 %v922_v0  ;;  %911 = vmatpush3.bf16.msra.mxu1 %v922_v0 }
 0x13d   :  { %956 = vpow2.f32 %v297_v17  ;;  %323 = vadd.xlane.f32.xlu1 %v1283_v60  ;;  %309 = vadd.xlane.f32.xlu0 %v1278_v58 }
 0x13e   :  { %877 = vmatprep.subr.bf16.mxu0 %v923_v3  ;;  %904 = vmatprep.subr.bf16.mxu1 %v923_v3 }
 0x13f   :  { %v1287_v61 = vpop.eup %948 }
 0x140   :  { %v1289_v62 = vpop.eup %950  ;;  %878 = vmatpush3.bf16.msra.mxu0 %v923_v3  ;;  %912 = vmatpush3.bf16.msra.mxu1 %v923_v3 }
 0x141   :  { %311 = vadd.xlane.f32.xlu1 %v1289_v62  ;;  %325 = vadd.xlane.f32.xlu0 %v1287_v61 }
 0x142   :  { %879 = vmatprep.subr.bf16.mxu0 %v924_v5  ;;  %905 = vmatprep.subr.bf16.mxu1 %v924_v5 }
 0x143   :  { %v1296_v1 = vpop.eup %952 }
 0x144   :  { %v1298_v2 = vpop.eup %954  ;;  %880 = vmatpush3.bf16.msra.mxu0 %v924_v5  ;;  %913 = vmatpush3.bf16.msra.mxu1 %v924_v5 }
 0x145   :  { %327 = vadd.xlane.f32.xlu1 %v1298_v2  ;;  %313 = vadd.xlane.f32.xlu0 %v1296_v1 }
 0x146   :  { %881 = vmatprep.subr.bf16.mxu0 %v925_v6  ;;  %906 = vmatprep.subr.bf16.mxu1 %v925_v6 }
 0x147   :  { %v1305_v4 = vpop.eup %956 }
 0x148   :  { %882 = vmatpush3.bf16.msra.mxu0 %v925_v6  ;;  %914 = vmatpush3.bf16.msra.mxu1 %v925_v6 }
 0x149   :  { %329 = vadd.xlane.f32.xlu0 %v1305_v4 }
 0x1b5   :  { %v300_v7 = vpop.xlane.xlu1 %299 }
 0x1b6   :  { %958 = vrcp.f32 %v300_v7 }
 0x1b9   :  { %v316_v8 = vpop.xlane.xlu1 %315 }
 0x1ba   :  { %v302_v9 = vpop.xlane.xlu0 %301 }
 0x1bb   :  { %960 = vrcp.f32 %v302_v9 }
 0x1bc   :  { %962 = vrcp.f32 %v316_v8 }
 0x1be   :  { %v304_v10 = vpop.xlane.xlu1 %303  ;;  %v318_v13 = vpop.xlane.xlu0 %317 }
 0x1bf   :  { %964 = vrcp.f32 %v318_v13 }
 0x1c0   :  { %966 = vrcp.f32 %v304_v10  ;;  %v959_v16 = vpop.eup %958 }
 0x1c1   :  { %v347_v21 = vmul.f32 %v959_v16, %v1239_v50 }
 0x1c2   :  { %v320_v14 = vpop.xlane.xlu1 %319  ;;  %v306_v15 = vpop.xlane.xlu0 %305 }
 0x1c3   :  { %968 = vrcp.f32 %v306_v15 }
 0x1c4   :  { %970 = vrcp.f32 %v320_v14 }
 0x1c5   :  { %v961_v37 = vpop.eup %960 }
 0x1c6   :  { %v308_v18 = vpop.xlane.xlu1 %307  ;;  %v322_v19 = vpop.xlane.xlu0 %321  ;;  %v348_v49 = vmul.f32 %v961_v37, %v1246_v28 }
 0x1c7   :  { %v963_v22 = vpop.eup %962  ;;  %972 = vrcp.f32 %v322_v19 }
 0x1c8   :  { %v363_v23 = vpack.c.bf16 %v348_v49, %v347_v21  ;;  %974 = vrcp.f32 %v308_v18  ;;  %v355_v25 = vmul.f32 %v963_v22, %v1244_v27 }
 0x1c9   :  { %v965_v57 = vpop.eup %964 }
 0x1ca   :  { %v324_v24 = vpop.xlane.xlu1 %323  ;;  %801 = vst [vmem:[%s1406_s5] sm:$0xff] %v363_v23   ;;  %883 = vmatprep.mubr.bf16.mxu0 %v363_v23  ;;  %v310_v63 = vpop.xlane.xlu0 %309  ;;  %v356_v11 = vmul.f32 %v965_v57, %v1252_v32 }
 0x1cb   :  { %v967_v12 = vpop.eup %966  ;;  %976 = vrcp.f32 %v310_v63 }
 0x1cc   :  { %v367_v50 = vpack.c.bf16 %v356_v11, %v355_v25  ;;  %978 = vrcp.f32 %v324_v24  ;;  %v349_v31 = vmul.f32 %v967_v12, %v1254_v33 }
 0x1cd   :  { %v969_v28 = vpop.eup %968 }
 0x1ce   :  { %v312_v29 = vpop.xlane.xlu1 %311  ;;  %v326_v30 = vpop.xlane.xlu0 %325  ;;  %847 = vst [vmem:[%s1406_s5 + $0x20] sm:$0xff] %v367_v50   ;;  %891 = vmatprep.mubr.bf16.mxu1 %v367_v50  ;;  %v350_v20 = vmul.f32 %v969_v28, %v1260_v41 }
 0x1cf   :  { %v971_v26 = vpop.eup %970  ;;  %980 = vrcp.f32 %v326_v30 }
 0x1d0   :  { %v364_v27 = vpack.c.bf16 %v350_v20, %v349_v31  ;;  %982 = vrcp.f32 %v312_v29  ;;  %v357_v36 = vmul.f32 %v971_v26, %v1262_v42 }
 0x1d1   :  { %v973_v32 = vpop.eup %972 }
 0x1d2   :  { %v328_v34 = vpop.xlane.xlu1 %327  ;;  %v314_v35 = vpop.xlane.xlu0 %313  ;;  %844 = vst [vmem:[%s1406_s5 + $0x8] sm:$0xff] %v364_v27   ;;  %884 = vmatmul.mubr.bf16.vlgmr.msra.gmra.mrb[0].mxu0 %v364_v27  ;;  %v358_v38 = vmul.f32 %v973_v32, %v1271_v51 }
 0x1d3   :  { %v975_v39 = vpop.eup %974  ;;  %984 = vrcp.f32 %v314_v35 }
 0x1d4   :  { %986 = vrcp.f32 %v328_v34  ;;  %v368_v33 = vpack.c.bf16 %v358_v38, %v357_v36  ;;  %v351_v43 = vmul.f32 %v975_v39, %v1273_v53 }
 0x1d5   :  { %v977_v41 = vpop.eup %976 }
 0x1d6   :  { %v330_v40 = vpop.xlane.xlu0 %329  ;;  %848 = vst [vmem:[%s1406_s5 + $0x28] sm:$0xff] %v368_v33   ;;  %892 = vmatmul.mubr.bf16.vlgmr.msra.gmra.mrb[0].mxu1 %v368_v33  ;;  %v352_v44 = vmul.f32 %v977_v41, %v1278_v58  ;;  %v979_v45 = vpop.eup %978 }
 0x1d7   :  { %988 = vrcp.f32 %v330_v40  ;;  %v359_v47 = vmul.f32 %v979_v45, %v1283_v60 }
 0x1d8   :  { %v365_v42 = vpack.c.bf16 %v352_v44, %v351_v43 }
 0x1d9   :  { %v981_v46 = vpop.eup %980 }
 0x1da   :  { %845 = vst [vmem:[%s1406_s5 + $0x10] sm:$0xff] %v365_v42   ;;  %887 = vmatprep.mubr.bf16.mxu0 %v365_v42  ;;  %v360_v48 = vmul.f32 %v981_v46, %v1287_v61  ;;  %v983_v51 = vpop.eup %982 }
 0x1db   :  { %v353_v53 = vmul.f32 %v983_v51, %v1289_v62 }
 0x1dc   :  { %v369_v52 = vpack.c.bf16 %v360_v48, %v359_v47 }
 0x1dd   :  { %v985_v54 = vpop.eup %984 }
 0x1de   :  { %v987_v55 = vpop.eup %986  ;;  %849 = vst [vmem:[%s1406_s5 + $0x30] sm:$0xff] %v369_v52   ;;  %895 = vmatprep.mubr.bf16.mxu1 %v369_v52  ;;  %v354_v56 = vmul.f32 %v985_v54, %v1296_v1 }
 0x1df   :  { %v361_v59 = vmul.f32 %v987_v55, %v1298_v2 }
 0x1e0   :  { %v366_v17 = vpack.c.bf16 %v354_v56, %v353_v53 }
 0x1e1   :  { %v989_v58 = vpop.eup %988 }
 0x1e2   :  { %v362_v60 = vmul.f32 %v989_v58, %v1305_v4  ;;  %846 = vst [vmem:[%s1406_s5 + $0x18] sm:$0xff] %v366_v17   ;;  %888 = vmatmul.mubr.bf16.gmra.mrb[4].mxu0 %v366_v17 }
 0x1e4   :  { %v370_v61 = vpack.c.bf16 %v362_v60, %v361_v59 }
 0x1e6   :  { %850 = vst [vmem:[%s1406_s5 + $0x38] sm:$0xff] %v370_v61   ;;  %896 = vmatmul.mubr.bf16.gmra.mrb[4].mxu1 %v370_v61 }
 0x2a5   :  { %v885_v62 = vpop.f32.mrb[0].mxu0 }
 0x2a6   :  { %v606_v0 = vsub.f32 0.0, %v885_v62  ;;  %v541_v1 = vpop.f32.mrb[1].mxu0 }
 0x2a7   :  { %v604_v3 = vsub.f32 0.0, %v541_v1  ;;  %v886_v5 = vpop.f32.mrb[2].mxu0 }
 0x2a8   :  { %v624_v6 = vmul.f32 1.442695, %v606_v0  ;;  %v607_v2 = vsub.f32 0.0, %v886_v5  ;;  %v544_v7 = vpop.f32.mrb[3].mxu0 }
 0x2a9   :  { %v620_v4 = vmul.f32 1.442695, %v604_v3  ;;  %v605_v8 = vsub.f32 0.0, %v544_v7  ;;  %v893_v9 = vpop.f32.mrb[0].mxu1 }
 0x2aa   :  { %990 = vpow2.f32 %v624_v6  ;;  %v626_v10 = vmul.f32 1.442695, %v607_v2  ;;  %v614_v13 = vsub.f32 0.0, %v893_v9  ;;  %v573_v14 = vpop.f32.mrb[1].mxu1 }
 0x2ab   :  { %992 = vpow2.f32 %v620_v4  ;;  %v622_v15 = vmul.f32 1.442695, %v605_v8  ;;  %v612_v16 = vsub.f32 0.0, %v573_v14  ;;  %v894_v37 = vpop.f32.mrb[2].mxu1 }
 0x2ac   :  { %994 = vpow2.f32 %v626_v10  ;;  %v640_v18 = vmul.f32 1.442695, %v614_v13  ;;  %v615_v19 = vsub.f32 0.0, %v894_v37  ;;  %v576_v21 = vpop.f32.mrb[3].mxu1 }
 0x2ad   :  { %996 = vpow2.f32 %v622_v15  ;;  %v636_v49 = vmul.f32 1.442695, %v612_v16  ;;  %v613_v22 = vsub.f32 0.0, %v576_v21 }
 0x2ae   :  { %998 = vpow2.f32 %v640_v18  ;;  %v642_v23 = vmul.f32 1.442695, %v615_v19 }
 0x2af   :  { %1000 = vpow2.f32 %v636_v49  ;;  %v638_v57 = vmul.f32 1.442695, %v613_v22 }
 0x2b0   :  { %1002 = vpow2.f32 %v642_v23 }
 0x2b1   :  { %1004 = vpow2.f32 %v638_v57 }
 0x2b4   :  { %v991_v24 = vpop.eup %990 }
 0x2b5   :  { %v993_v63 = vpop.eup %992  ;;  %v654_v25 = vadd.f32 1.0, %v991_v24  ;;  %v889_v11 = vpop.f32.mrb[4].mxu0 }
 0x2b6   :  { %v995_v12 = vpop.eup %994  ;;  %v652_v50 = vadd.f32 1.0, %v993_v63  ;;  %v557_v28 = vpop.f32.mrb[5].mxu0  ;;  %v610_v31 = vsub.f32 0.0, %v889_v11 }
 0x2b7   :  { %v997_v29 = vpop.eup %996  ;;  %1006 = vrcp.f32 %v654_v25  ;;  %v655_v30 = vadd.f32 1.0, %v995_v12  ;;  %v890_v20 = vpop.f32.mrb[6].mxu0  ;;  %v608_v32 = vsub.f32 0.0, %v557_v28 }
 0x2b8   :  { %v999_v26 = vpop.eup %998  ;;  %1008 = vrcp.f32 %v652_v50  ;;  %v653_v27 = vadd.f32 1.0, %v997_v29  ;;  %v560_v34 = vpop.f32.mrb[7].mxu0  ;;  %v611_v39 = vsub.f32 0.0, %v890_v20  ;;  %v632_v46 = vmul.f32 1.442695, %v610_v31 }
 0x2b9   :  { %v897_v35 = vpop.f32.mrb[4].mxu1  ;;  %v1001_v36 = vpop.eup %1000  ;;  %1010 = vrcp.f32 %v655_v30  ;;  %v662_v38 = vadd.f32 1.0, %v999_v26  ;;  %v609_v43 = vsub.f32 0.0, %v560_v34  ;;  %v628_v52 = vmul.f32 1.442695, %v608_v32 }
 0x2ba   :  { %v589_v33 = vpop.f32.mrb[5].mxu1  ;;  %v1003_v41 = vpop.eup %1002  ;;  %1012 = vrcp.f32 %v653_v27  ;;  %v660_v40 = vadd.f32 1.0, %v1001_v36  ;;  %v618_v47 = vsub.f32 0.0, %v897_v35  ;;  %v634_v55 = vmul.f32 1.442695, %v611_v39 }
 0x2bb   :  { %v898_v44 = vpop.f32.mrb[6].mxu1  ;;  %v1005_v45 = vpop.eup %1004  ;;  %1014 = vrcp.f32 %v662_v38  ;;  %v663_v42 = vadd.f32 1.0, %v1003_v41  ;;  %v616_v54 = vsub.f32 0.0, %v589_v33  ;;  %v630_v56 = vmul.f32 1.442695, %v609_v43 }
 0x2bc   :  { %v592_v48 = vpop.f32.mrb[7].mxu1  ;;  %1016 = vrcp.f32 %v660_v40  ;;  %v661_v51 = vadd.f32 1.0, %v1005_v45  ;;  %v619_v53 = vsub.f32 0.0, %v898_v44  ;;  %v648_v17 = vmul.f32 1.442695, %v618_v47 }
 0x2bd   :  { %1018 = vrcp.f32 %v663_v42  ;;  %v617_v58 = vsub.f32 0.0, %v592_v48  ;;  %v644_v59 = vmul.f32 1.442695, %v616_v54 }
 0x2be   :  { %1020 = vrcp.f32 %v661_v51  ;;  %v650_v61 = vmul.f32 1.442695, %v619_v53 }
 0x2bf   :  { %1022 = vpow2.f32 %v632_v46  ;;  %v646_v0 = vmul.f32 1.442695, %v617_v58 }
 0x2c0   :  { %1024 = vpow2.f32 %v628_v52 }
 0x2c1   :  { %v1007_v60 = vpop.eup %1006  ;;  %1026 = vpow2.f32 %v634_v55 }
 0x2c2   :  { %v1009_v62 = vpop.eup %1008  ;;  %702 = vst [vmem:[%s1407_s4 + $0x10] sm:$0xff] %v1007_v60  ;;  %1028 = vpow2.f32 %v630_v56 }
 0x2c3   :  { %v1011_v1 = vpop.eup %1010  ;;  %700 = vst [vmem:[%s1407_s4] sm:$0xff] %v1009_v62  ;;  %1030 = vpow2.f32 %v648_v17 }
 0x2c4   :  { %v1013_v3 = vpop.eup %1012  ;;  %703 = vst [vmem:[%s1407_s4 + $0x18] sm:$0xff] %v1011_v1  ;;  %1032 = vpow2.f32 %v644_v59 }
 0x2c5   :  { %v1015_v5 = vpop.eup %1014  ;;  %701 = vst [vmem:[%s1407_s4 + $0x8] sm:$0xff] %v1013_v3  ;;  %1034 = vpow2.f32 %v650_v61 }
 0x2c6   :  { %v1017_v6 = vpop.eup %1016  ;;  %710 = vst [vmem:[%s1407_s4 + $0x50] sm:$0xff] %v1015_v5  ;;  %1036 = vpow2.f32 %v646_v0 }
 0x2c7   :  { %v1019_v2 = vpop.eup %1018  ;;  %708 = vst [vmem:[%s1407_s4 + $0x40] sm:$0xff] %v1017_v6 }
 0x2c8   :  { %v1021_v7 = vpop.eup %1020  ;;  %711 = vst [vmem:[%s1407_s4 + $0x58] sm:$0xff] %v1019_v2 }
 0x2c9   :  { %v1023_v4 = vpop.eup %1022  ;;  %709 = vst [vmem:[%s1407_s4 + $0x48] sm:$0xff] %v1021_v7 }
 0x2ca   :  { %v1025_v8 = vpop.eup %1024  ;;  %v658_v9 = vadd.f32 1.0, %v1023_v4 }
 0x2cb   :  { %v1027_v10 = vpop.eup %1026  ;;  %v656_v13 = vadd.f32 1.0, %v1025_v8 }
 0x2cc   :  { %v1029_v14 = vpop.eup %1028  ;;  %1038 = vrcp.f32 %v658_v9  ;;  %v659_v15 = vadd.f32 1.0, %v1027_v10 }
 0x2cd   :  { %v1031_v16 = vpop.eup %1030  ;;  %1040 = vrcp.f32 %v656_v13  ;;  %v657_v37 = vadd.f32 1.0, %v1029_v14 }
 0x2ce   :  { %v1033_v18 = vpop.eup %1032  ;;  %1042 = vrcp.f32 %v659_v15  ;;  %v666_v19 = vadd.f32 1.0, %v1031_v16 }
 0x2cf   :  { %v1035_v21 = vpop.eup %1034  ;;  %1044 = vrcp.f32 %v657_v37  ;;  %v664_v49 = vadd.f32 1.0, %v1033_v18 }
 0x2d0   :  { %v1037_v22 = vpop.eup %1036  ;;  %1046 = vrcp.f32 %v666_v19  ;;  %v667_v23 = vadd.f32 1.0, %v1035_v21 }
 0x2d1   :  { %1048 = vrcp.f32 %v664_v49  ;;  %v665_v57 = vadd.f32 1.0, %v1037_v22 }
 0x2d2   :  { %1050 = vrcp.f32 %v667_v23 }
 0x2d3   :  { %1052 = vrcp.f32 %v665_v57 }
 0x2d6   :  { %v1039_v24 = vpop.eup %1038 }
 0x2d7   :  { %v1041_v63 = vpop.eup %1040  ;;  %706 = vst [vmem:[%s1407_s4 + $0x30] sm:$0xff] %v1039_v24 }
 0x2d8   :  { %v1043_v25 = vpop.eup %1042  ;;  %704 = vst [vmem:[%s1407_s4 + $0x20] sm:$0xff] %v1041_v63 }
 0x2d9   :  { %v1045_v11 = vpop.eup %1044  ;;  %707 = vst [vmem:[%s1407_s4 + $0x38] sm:$0xff] %v1043_v25 }
 0x2da   :  { %v1047_v12 = vpop.eup %1046  ;;  %705 = vst [vmem:[%s1407_s4 + $0x28] sm:$0xff] %v1045_v11 }
 0x2db   :  { %v1049_v50 = vpop.eup %1048  ;;  %714 = vst [vmem:[%s1407_s4 + $0x70] sm:$0xff] %v1047_v12 }
 0x2dc   :  { %v1051_v28 = vpop.eup %1050  ;;  %712 = vst [vmem:[%s1407_s4 + $0x60] sm:$0xff] %v1049_v50 }
 0x2dd   :  { %v1053_v29 = vpop.eup %1052  ;;  %715 = vst [vmem:[%s1407_s4 + $0x78] sm:$0xff] %v1051_v28 }
 0x2de   :  { %713 = vst [vmem:[%s1407_s4 + $0x68] sm:$0xff] %v1053_v29 }

</bundles_post_ra>
